<compile_context>
chip_gen: v7x
topology: tpu7x:2x2x1
jax: 0.10.0
libtpu: 0.0.40
codegen_flags: <defaults>
</compile_context>

<pallas_src>
import math
import functools

import jax
import jax.numpy as jnp
from jax.experimental import pallas as pl
from jax.experimental.pallas import tpu as pltpu

# ----------------------------- config (small) -------------------------------
GRID_SIZE = 16
WEATHER_FEATURES = 4
D_MODEL = 32
N_HEAD = 4
N_LAYERS = 2
F_IN = GRID_SIZE + WEATHER_FEATURES
D_FF = 4 * D_MODEL
D_HALF = D_MODEL // 2
HD = D_MODEL // N_HEAD
BATCH = 2
SEQ = 8
ROWS = BATCH * SEQ                      # flattened residual rows, r = b*SEQ + s
OUT_ROWS = 8                            # padded output/pooling rows (>= BATCH)

# ------------------------- packed-slab row layouts ---------------------------
# per-layer slab: (N_LAYERS, LAYER_ROWS, 128)
LR_QKV = 0                              # D_MODEL rows, lanes 0:3D  = [Wq|Wk|Wv]
LR_WO = LR_QKV + D_MODEL                # D_MODEL rows, lanes 0:D
LR_FFN_W1 = LR_WO + D_MODEL             # D_MODEL rows, full 128 lanes
LR_FFN_W2T = LR_FFN_W1 + D_MODEL        # D_MODEL rows, full 128 lanes (ffn_w2^T)
LR_QKV_B = LR_FFN_W2T + D_MODEL         # 1 row, lanes 0:3D
LR_FFN_B1 = LR_QKV_B + 1                # 1 row, 128 lanes
LR_FFN_B2 = LR_FFN_B1 + 1               # 1 row, lanes 0:D
LR_BO = LR_FFN_B2 + 1                   # 1 row, lanes 0:D
LR_N1W = LR_BO + 1
LR_N1B = LR_N1W + 1
LR_N2W = LR_N1B + 1
LR_N2B = LR_N2W + 1
LAYER_ROWS = ((LR_N2B + 1 + 7) // 8) * 8            # 136

# head slab: (HEAD_ROWS, 128)
HR_NORM_W = 0
HR_NORM_B = 1
HR_INPROJ_W = 2                         # F_IN rows, lanes 0:D
HR_INPROJ_B = HR_INPROJ_W + F_IN        # 1 row
HR_PE = HR_INPROJ_B + 1                 # ROWS rows (pre-expanded pos. encoding)
HR_POOL = HR_PE + ROWS                  # OUT_ROWS rows, lanes 0:ROWS
HR_OUT_W1 = HR_POOL + OUT_ROWS          # D_MODEL rows, lanes 0:D_HALF
HR_OUT_B1 = HR_OUT_W1 + D_MODEL
HR_OUT_W2 = HR_OUT_B1 + 1               # D_HALF rows, lanes 0:GRID_SIZE
HR_OUT_B2 = HR_OUT_W2 + D_HALF
HEAD_ROWS = ((HR_OUT_B2 + 1 + 7) // 8) * 8           # 104


# --------------------------- small math helpers -----------------------------
def _gelu(x):
    # tanh-approximate GELU (routes to EUP; ~1e-4 deviation from exact erf here)
    return 0.5 * x * (1.0 + jnp.tanh(0.7978845608028654 * (x + 0.044715 * x * x * x)))


def _gelu_exact(x):
    # exact (erf-based) GELU for the pure-JAX reference (matches nn.GELU()).
    return 0.5 * x * (1.0 + jax.lax.erf(x / math.sqrt(2.0)))


def _layer_norm(x, w, b, eps=1e-5):
    mu = jnp.mean(x, axis=-1, keepdims=True)
    xc = x - mu
    var = jnp.mean(xc * xc, axis=-1, keepdims=True)
    return xc * jax.lax.rsqrt(var + eps) * w + b


# ------------------------------- Pallas kernel ------------------------------
def fire_transformer_kernel(x_ref, layers_ref, head_ref, o_ref,
                            *, n_layers, n_head, seq):
    R, F = x_ref.shape                          # (batch*seq, F_IN)
    D = D_MODEL
    hd = D // n_head
    scale = 1.0 / math.sqrt(hd)
    bf16 = jnp.bfloat16
    f32 = jnp.float32
    PREC = jax.lax.Precision.DEFAULT            # single MXU pass (bf16 operands)

    # ---- input norm + input projection (GELU) + positional encoding ----
    x = x_ref[...]
    x = _layer_norm(x, head_ref[HR_NORM_W:HR_NORM_W + 1, 0:F],
                    head_ref[HR_NORM_B:HR_NORM_B + 1, 0:F])
    w_in = head_ref[HR_INPROJ_W:HR_INPROJ_W + F, 0:D].astype(bf16)
    h = _gelu(jnp.dot(x.astype(bf16), w_in, precision=PREC,
                      preferred_element_type=f32)
              + head_ref[HR_INPROJ_B:HR_INPROJ_B + 1, 0:D])
    h = h + head_ref[HR_PE:HR_PE + R, 0:D]      # pre-expanded per-row PE

    # ---- additive block-diagonal mask, hoisted out of the layer loop ----
    # (PyTorch MHA attends across the batch axis at each fixed seq position;
    #  rows are r = b*seq + s, so row r may attend to row c iff c%seq == r%seq)
    ri = jax.lax.broadcasted_iota(jnp.int32, (R, R), 0)
    ci = jax.lax.broadcasted_iota(jnp.int32, (R, R), 1)
    mask_add = jnp.where((ri % seq) == (ci % seq),
                         jnp.float32(0.0), jnp.float32(-1e30))

    # ---- transformer blocks (statically unrolled) ----
    for l in range(n_layers):
        w_qkv = layers_ref[l, LR_QKV:LR_QKV + D, 0:3 * D].astype(bf16)   # (D, 3D)
        b_qkv = layers_ref[l, LR_QKV_B:LR_QKV_B + 1, 0:3 * D]            # (1, 3D)
        w_o = layers_ref[l, LR_WO:LR_WO + D, 0:D].astype(bf16)           # (D, D)
        b_o = layers_ref[l, LR_BO:LR_BO + 1, 0:D]
        n1w = layers_ref[l, LR_N1W:LR_N1W + 1, 0:D]
        n1b = layers_ref[l, LR_N1B:LR_N1B + 1, 0:D]
        n2w = layers_ref[l, LR_N2W:LR_N2W + 1, 0:D]
        n2b = layers_ref[l, LR_N2B:LR_N2B + 1, 0:D]
        w1 = layers_ref[l, LR_FFN_W1:LR_FFN_W1 + D, :].astype(bf16)      # (D, D_FF)
        w2t = layers_ref[l, LR_FFN_W2T:LR_FFN_W2T + D, :].astype(bf16)   # (D, D_FF)
        b1 = layers_ref[l, LR_FFN_B1:LR_FFN_B1 + 1, :]                   # (1, D_FF)
        b2 = layers_ref[l, LR_FFN_B2:LR_FFN_B2 + 1, 0:D]                 # (1, D)

        # --- fused QKV projection: ONE (R,D)@(D,3D) MXU push ---
        qkv = jnp.dot(h.astype(bf16), w_qkv, precision=PREC,
                      preferred_element_type=f32) + b_qkv                # (R, 3D)
        qkv_b = qkv.astype(bf16)

        # --- per-head attention with plain 2-D dots (hd=8, R=16) ---
        ctx_heads = []
        for hh in range(n_head):
            q = qkv_b[:, hh * hd:(hh + 1) * hd]                          # (R, hd)
            k = qkv_b[:, D + hh * hd:D + (hh + 1) * hd]
            v = qkv_b[:, 2 * D + hh * hd:2 * D + (hh + 1) * hd]
            sc = jax.lax.dot_general(q, k, (((1,), (1,)), ((), ())),
                                     precision=PREC,
                                     preferred_element_type=f32)         # (R, R)
            sc = sc * scale + mask_add
            sc = sc - jnp.max(sc, axis=-1, keepdims=True)
            att = jnp.exp(sc)
            att = att * pl.reciprocal(jnp.sum(att, axis=-1, keepdims=True),
                                      approx=True)
            ctx_heads.append(jnp.dot(att.astype(bf16), v, precision=PREC,
                                     preferred_element_type=f32))        # (R, hd)

        # --- fused output projection: concat heads along lanes, ONE dot ---
        ctx = jnp.concatenate(ctx_heads, axis=1)                         # (R, D)
        attn_out = jnp.dot(ctx.astype(bf16), w_o, precision=PREC,
                           preferred_element_type=f32) + b_o             # (R, D)

        # --- residual + norm1, feed-forward, residual + norm2 ---
        h = _layer_norm(h + attn_out, n1w, n1b)
        f = _gelu(jnp.dot(h.astype(bf16), w1, precision=PREC,
                          preferred_element_type=f32) + b1)              # (R, D_FF)
        f = jax.lax.dot_general(f.astype(bf16), w2t, (((1,), (1,)), ((), ())),
                                precision=PREC,
                                preferred_element_type=f32) + b2         # (R, D)
        h = _layer_norm(h + f, n2w, n2b)

    # ---- mean over sequence (tiny matmul against precomputed pooling) ----
    pool = head_ref[HR_POOL:HR_POOL + OUT_ROWS, 0:R].astype(bf16)        # (8, R)
    pooled = jnp.dot(pool, h.astype(bf16), precision=PREC,
                     preferred_element_type=f32)                         # (8, D)
    w_o1 = head_ref[HR_OUT_W1:HR_OUT_W1 + D, 0:D_HALF].astype(bf16)
    z = _gelu(jnp.dot(pooled.astype(bf16), w_o1, precision=PREC,
                      preferred_element_type=f32)
              + head_ref[HR_OUT_B1:HR_OUT_B1 + 1, 0:D_HALF])             # (8, D_HALF)
    w_o2 = head_ref[HR_OUT_W2:HR_OUT_W2 + D_HALF, :].astype(bf16)        # (D_HALF,128)
    z = jnp.dot(z.astype(bf16), w_o2, precision=PREC,
                preferred_element_type=f32) \
        + head_ref[HR_OUT_B2:HR_OUT_B2 + 1, :]                           # (8, 128)
    # lane-dense full-tile store; wrapper slices back to (BATCH, GRID_SIZE)
    o_ref[...] = 1.0 / (1.0 + jnp.exp(-z))


# ------------------------------- wrapper ------------------------------------
def fire_transformer_forward(x, layers_slab, head_slab):
    B, S, F = x.shape
    x_rows = x.reshape(B * S, F).astype(jnp.float32)       # rows r = b*S + s
    kernel = functools.partial(fire_transformer_kernel,
                               n_layers=N_LAYERS, n_head=N_HEAD, seq=S)
    out_pad = pl.pallas_call(
        kernel,
        out_shape=jax.ShapeDtypeStruct((OUT_ROWS, 128), jnp.float32),
        in_specs=[pl.BlockSpec(memory_space=pltpu.MemorySpace.VMEM)] * 3,
        out_specs=pl.BlockSpec(memory_space=pltpu.MemorySpace.VMEM),
        cost_estimate=pl.CostEstimate(flops=900_000,
                                      transcendentals=8_000,
                                      bytes_accessed=200_000),
    )(x_rows, layers_slab, head_slab)
    return out_pad[:B, :GRID_SIZE]


# --------------------------- parameter packing -------------------------------
def pack_params(p, batch, seq):
    """Pack the FireTransformer params into two lane-128 f32 slabs."""
    assert batch <= OUT_ROWS and batch * seq == ROWS
    layers = jnp.zeros((N_LAYERS, LAYER_ROWS, 128), jnp.float32)
    for l in range(N_LAYERS):
        layers = layers.at[l, LR_QKV:LR_QKV + D_MODEL, 0:3 * D_MODEL].set(
            p['attn_in_w'][l])                                   # dense [Wq|Wk|Wv]
        layers = layers.at[l, LR_QKV_B, 0:3 * D_MODEL].set(p['attn_in_b'][l][0])
        layers = layers.at[l, LR_WO:LR_WO + D_MODEL, 0:D_MODEL].set(
            p['attn_out_w'][l])
        layers = layers.at[l, LR_BO, 0:D_MODEL].set(p['attn_out_b'][l][0])
        layers = layers.at[l, LR_FFN_W1:LR_FFN_W1 + D_MODEL, :].set(p['ffn_w1'][l])
        layers = layers.at[l, LR_FFN_W2T:LR_FFN_W2T + D_MODEL, :].set(
            p['ffn_w2'][l].T)
        layers = layers.at[l, LR_FFN_B1, :].set(p['ffn_b1'][l][0])
        layers = layers.at[l, LR_FFN_B2, 0:D_MODEL].set(p['ffn_b2'][l][0])
        layers = layers.at[l, LR_N1W, 0:D_MODEL].set(p['n1_w'][l][0])
        layers = layers.at[l, LR_N1B, 0:D_MODEL].set(p['n1_b'][l][0])
        layers = layers.at[l, LR_N2W, 0:D_MODEL].set(p['n2_w'][l][0])
        layers = layers.at[l, LR_N2B, 0:D_MODEL].set(p['n2_b'][l][0])

    head = jnp.zeros((HEAD_ROWS, 128), jnp.float32)
    head = head.at[HR_NORM_W, 0:F_IN].set(p['in_norm_w'][0])
    head = head.at[HR_NORM_B, 0:F_IN].set(p['in_norm_b'][0])
    head = head.at[HR_INPROJ_W:HR_INPROJ_W + F_IN, 0:D_MODEL].set(p['in_proj_w'])
    head = head.at[HR_INPROJ_B, 0:D_MODEL].set(p['in_proj_b'][0])
    pe_rows = jnp.tile(p['pe'], (batch, 1))     # row r = b*seq + s  ->  pe[s]
    head = head.at[HR_PE:HR_PE + batch * seq, 0:D_MODEL].set(pe_rows)
    r_idx = jnp.arange(batch * seq)
    pool = (r_idx[None, :] // seq == jnp.arange(batch)[:, None]).astype(jnp.float32)
    head = head.at[HR_POOL:HR_POOL + batch, 0:batch * seq].set(pool / float(seq))
    head = head.at[HR_OUT_W1:HR_OUT_W1 + D_MODEL, 0:D_HALF].set(p['out_w1'])
    head = head.at[HR_OUT_B1, 0:D_HALF].set(p['out_b1'][0])
    head = head.at[HR_OUT_W2:HR_OUT_W2 + D_HALF, 0:GRID_SIZE].set(p['out_w2'])
    head = head.at[HR_OUT_B2, 0:GRID_SIZE].set(p['out_b2'][0])
    return layers, head


# --------------------------- parameter construction -------------------------
def make_pe(max_len, d_model):
    pos = jnp.arange(max_len, dtype=jnp.float32)[:, None]
    div = jnp.exp(jnp.arange(0, d_model, 2, dtype=jnp.float32)
                  * (-math.log(10000.0) / d_model))
    pe = jnp.zeros((max_len, d_model), jnp.float32)
    pe = pe.at[:, 0::2].set(jnp.sin(pos * div))
    pe = pe.at[:, 1::2].set(jnp.cos(pos * div))
    return pe


def init_params(key, seq_len):
    keys = iter(jax.random.split(key, 32))

    def w(shape):
        return 0.02 * jax.random.normal(next(keys), shape, dtype=jnp.float32)

    return dict(
        in_norm_w=jnp.ones((1, F_IN), jnp.float32),
        in_norm_b=jnp.zeros((1, F_IN), jnp.float32),
        in_proj_w=w((F_IN, D_MODEL)),
        in_proj_b=w((1, D_MODEL)),
        attn_in_w=w((N_LAYERS, D_MODEL, 3 * D_MODEL)),
        attn_in_b=w((N_LAYERS, 1, 3 * D_MODEL)),
        attn_out_w=w((N_LAYERS, D_MODEL, D_MODEL)),
        attn_out_b=w((N_LAYERS, 1, D_MODEL)),
        n1_w=jnp.ones((N_LAYERS, 1, D_MODEL), jnp.float32),
        n1_b=jnp.zeros((N_LAYERS, 1, D_MODEL), jnp.float32),
        n2_w=jnp.ones((N_LAYERS, 1, D_MODEL), jnp.float32),
        n2_b=jnp.zeros((N_LAYERS, 1, D_MODEL), jnp.float32),
        ffn_w1=w((N_LAYERS, D_MODEL, D_FF)),
        ffn_b1=w((N_LAYERS, 1, D_FF)),
        ffn_w2=w((N_LAYERS, D_FF, D_MODEL)),
        ffn_b2=w((N_LAYERS, 1, D_MODEL)),
        out_w1=w((D_MODEL, D_HALF)),
        out_b1=w((1, D_HALF)),
        out_w2=w((D_HALF, GRID_SIZE)),
        out_b2=w((1, GRID_SIZE)),
        pe=make_pe(seq_len, D_MODEL),
    )


# -------------------------- pure-JAX reference ------------------------------
def reference_forward(x, p):
    B, S, _ = x.shape
    hd = D_MODEL // N_HEAD
    h = _layer_norm(x, p['in_norm_w'][0], p['in_norm_b'][0])
    h = _gelu_exact(h @ p['in_proj_w'] + p['in_proj_b'][0])
    h = h + p['pe'][None, :, :]
    for l in range(N_LAYERS):
        qkv = h @ p['attn_in_w'][l] + p['attn_in_b'][l][0]
        q, k, v = (qkv[..., :D_MODEL], qkv[..., D_MODEL:2 * D_MODEL],
                   qkv[..., 2 * D_MODEL:])
        qh = q.reshape(B, S, N_HEAD, hd)
        kh = k.reshape(B, S, N_HEAD, hd)
        vh = v.reshape(B, S, N_HEAD, hd)
        # attention over dim 0 (PyTorch MHA, batch_first=False, given (B,S,D))
        sc = jnp.einsum('bshd,cshd->shbc', qh, kh) / math.sqrt(hd)
        att = jax.nn.softmax(sc, axis=-1)
        ao = jnp.einsum('shbc,cshd->bshd', att, vh).reshape(B, S, D_MODEL)
        ao = ao @ p['attn_out_w'][l] + p['attn_out_b'][l][0]
        h = _layer_norm(h + ao, p['n1_w'][l][0], p['n1_b'][l][0])
        f = _gelu_exact(h @ p['ffn_w1'][l] + p['ffn_b1'][l][0])
        f = f @ p['ffn_w2'][l] + p['ffn_b2'][l][0]
        h = _layer_norm(h + f, p['n2_w'][l][0], p['n2_b'][l][0])
    pooled = h.mean(axis=1)
    z = _gelu_exact(pooled @ p['out_w1'] + p['out_b1'][0])
    z = z @ p['out_w2'] + p['out_b2'][0]
    return jax.nn.sigmoid(z)


# --------------------------------- main --------------------------------------
if __name__ == "__main__":
    # 'highest' keeps the pure-JAX reference exact; kernel matmuls pin
    # precision=DEFAULT with bf16 operands (single MXU pass) explicitly.
    jax.config.update("jax_default_matmul_precision", "highest")

    key = jax.random.PRNGKey(0)
    kx, kp = jax.random.split(key)
    x = jax.random.normal(kx, (BATCH, SEQ, F_IN), dtype=jnp.float32)
    params = init_params(kp, SEQ)

    # one-time operand packing (outside the jitted forward)
    layers_slab, head_slab = pack_params(params, BATCH, SEQ)

    fwd = jax.jit(fire_transformer_forward)
    out = jax.block_until_ready(fwd(x, layers_slab, head_slab))

    ref = reference_forward(x, params)
    assert out.shape == (BATCH, GRID_SIZE)
    assert bool(jnp.isfinite(out).all())
    err = float(jnp.max(jnp.abs(out - ref)))
    assert err < 1e-2, f"max abs error {err}"

    print("KERNEL_OK")
</pallas_src>

<mosaic_0001>
module attributes {stable_mosaic.version = 11 : i64} {
  func.func @fire_transformer_kernel(%arg0: memref<16x20xf32, #tpu.memory_space<vmem>>, %arg1: memref<2x136x128xf32, #tpu.memory_space<vmem>>, %arg2: memref<104x128xf32, #tpu.memory_space<vmem>>, %arg3: memref<8x128xf32, #tpu.memory_space<vmem>>) attributes {dimension_semantics = [], scalar_prefetch = 0 : i64, scratch_operands = 0 : i64, tpu.core_type = #tpu.core_type<tc>} {
    %c0 = arith.constant 0 : index
    %c0_0 = arith.constant 0 : index
    %0 = vector.load %arg0[%c0, %c0_0] : memref<16x20xf32, #tpu.memory_space<vmem>>, vector<16x20xf32>
    %c0_1 = arith.constant 0 : index
    %c0_2 = arith.constant 0 : index
    %1 = vector.load %arg2[%c0_1, %c0_2] : memref<104x128xf32, #tpu.memory_space<vmem>>, vector<1x20xf32>
    %c1 = arith.constant 1 : index
    %c0_3 = arith.constant 0 : index
    %2 = vector.load %arg2[%c1, %c0_3] : memref<104x128xf32, #tpu.memory_space<vmem>>, vector<1x20xf32>
    %cst = arith.constant dense<0.000000e+00> : vector<16xf32>
    %3 = vector.multi_reduction <add>, %0, %cst [1] : vector<16x20xf32> to vector<16xf32>
    %4 = vector.shape_cast %3 : vector<16xf32> to vector<16x1xf32>
    %cst_4 = arith.constant 2.000000e+01 : f32
    %5 = vector.broadcast %cst_4 : f32 to vector<16x1xf32>
    %6 = arith.divf %4, %5 : vector<16x1xf32>
    %7 = vector.broadcast %6 : vector<16x1xf32> to vector<16x20xf32>
    %8 = arith.subf %0, %7 : vector<16x20xf32>
    %9 = arith.mulf %8, %8 : vector<16x20xf32>
    %cst_5 = arith.constant dense<0.000000e+00> : vector<16xf32>
    %10 = vector.multi_reduction <add>, %9, %cst_5 [1] : vector<16x20xf32> to vector<16xf32>
    %11 = vector.shape_cast %10 : vector<16xf32> to vector<16x1xf32>
    %cst_6 = arith.constant 2.000000e+01 : f32
    %12 = vector.broadcast %cst_6 : f32 to vector<16x1xf32>
    %13 = arith.divf %11, %12 : vector<16x1xf32>
    %cst_7 = arith.constant 9.99999974E-6 : f32
    %14 = vector.broadcast %cst_7 : f32 to vector<16x1xf32>
    %15 = arith.addf %13, %14 : vector<16x1xf32>
    %16 = math.rsqrt %15 : vector<16x1xf32>
    %17 = vector.broadcast %16 : vector<16x1xf32> to vector<16x20xf32>
    %18 = arith.mulf %8, %17 : vector<16x20xf32>
    %19 = vector.broadcast %1 : vector<1x20xf32> to vector<16x20xf32>
    %20 = arith.mulf %18, %19 : vector<16x20xf32>
    %21 = vector.broadcast %2 : vector<1x20xf32> to vector<16x20xf32>
    %22 = arith.addf %20, %21 : vector<16x20xf32>
    %c2 = arith.constant 2 : index
    %c0_8 = arith.constant 0 : index
    %23 = vector.load %arg2[%c2, %c0_8] : memref<104x128xf32, #tpu.memory_space<vmem>>, vector<20x32xf32>
    %24 = arith.truncf %23 : vector<20x32xf32> to vector<20x32xbf16>
    %25 = arith.truncf %22 : vector<16x20xf32> to vector<16x20xbf16>
    %cst_9 = arith.constant dense<0.000000e+00> : vector<16x32xf32>
    %26 = tpu.matmul %25, %24, %cst_9 {dimension_numbers = #tpu.dot_dimension_numbers<[1], [0], [0], [1], [0, 0, 1, 1], [], []>} : vector<16x20xbf16>, vector<20x32xbf16>, vector<16x32xf32> -> vector<16x32xf32>
    %c22 = arith.constant 22 : index
    %c0_10 = arith.constant 0 : index
    %27 = vector.load %arg2[%c22, %c0_10] : memref<104x128xf32, #tpu.memory_space<vmem>>, vector<1x32xf32>
    %28 = vector.broadcast %27 : vector<1x32xf32> to vector<16x32xf32>
    %29 = arith.addf %26, %28 : vector<16x32xf32>
    %cst_11 = arith.constant 5.000000e-01 : f32
    %30 = vector.broadcast %cst_11 : f32 to vector<16x32xf32>
    %31 = arith.mulf %30, %29 : vector<16x32xf32>
    %cst_12 = arith.constant 4.471500e-02 : f32
    %32 = vector.broadcast %cst_12 : f32 to vector<16x32xf32>
    %33 = arith.mulf %32, %29 : vector<16x32xf32>
    %34 = arith.mulf %33, %29 : vector<16x32xf32>
    %35 = arith.mulf %34, %29 : vector<16x32xf32>
    %36 = arith.addf %29, %35 : vector<16x32xf32>
    %cst_13 = arith.constant 0.797884583 : f32
    %37 = vector.broadcast %cst_13 : f32 to vector<16x32xf32>
    %38 = arith.mulf %37, %36 : vector<16x32xf32>
    %39 = math.tanh %38 : vector<16x32xf32>
    %cst_14 = arith.constant 1.000000e+00 : f32
    %40 = vector.broadcast %cst_14 : f32 to vector<16x32xf32>
    %41 = arith.addf %40, %39 : vector<16x32xf32>
    %42 = arith.mulf %31, %41 : vector<16x32xf32>
    %c23 = arith.constant 23 : index
    %c0_15 = arith.constant 0 : index
    %43 = vector.load %arg2[%c23, %c0_15] : memref<104x128xf32, #tpu.memory_space<vmem>>, vector<16x32xf32>
    %44 = arith.addf %42, %43 : vector<16x32xf32>
    %45 = tpu.iota {dimensions = array<i32: 0>} : vector<16x16xi32>
    %46 = tpu.iota {dimensions = array<i32: 1>} : vector<16x16xi32>
    %c8_i32 = arith.constant 8 : i32
    %c0_i32 = arith.constant 0 : i32
    %47 = arith.cmpi eq, %c8_i32, %c0_i32 : i32
    %c1_i32 = arith.constant 1 : i32
    %48 = arith.select %47, %c1_i32, %c8_i32 : i32
    %49 = vector.broadcast %48 : i32 to vector<16x16xi32>
    %50 = arith.remsi %45, %49 : vector<16x16xi32>
    %c0_i32_16 = arith.constant 0 : i32
    %51 = vector.broadcast %c0_i32_16 : i32 to vector<16x16xi32>
    %52 = arith.cmpi ne, %50, %51 : vector<16x16xi32>
    %c0_i32_17 = arith.constant 0 : i32
    %53 = vector.broadcast %c0_i32_17 : i32 to vector<16x16xi32>
    %54 = arith.cmpi slt, %50, %53 : vector<16x16xi32>
    %c0_i32_18 = arith.constant 0 : i32
    %55 = arith.cmpi slt, %48, %c0_i32_18 : i32
    %56 = vector.broadcast %55 : i1 to vector<16x16xi1>
    %57 = vector.broadcast %56 : vector<16x16xi1> to vector<16x16xi1>
    %58 = arith.xori %54, %57 : vector<16x16xi1>
    %59 = arith.andi %58, %52 : vector<16x16xi1>
    %60 = vector.broadcast %48 : i32 to vector<16x16xi32>
    %61 = arith.addi %50, %60 : vector<16x16xi32>
    %62 = arith.select %59, %61, %50 : vector<16x16xi1>, vector<16x16xi32>
    %c8_i32_19 = arith.constant 8 : i32
    %c0_i32_20 = arith.constant 0 : i32
    %63 = arith.cmpi eq, %c8_i32_19, %c0_i32_20 : i32
    %c1_i32_21 = arith.constant 1 : i32
    %64 = arith.select %63, %c1_i32_21, %c8_i32_19 : i32
    %65 = vector.broadcast %64 : i32 to vector<16x16xi32>
    %66 = arith.remsi %46, %65 : vector<16x16xi32>
    %c0_i32_22 = arith.constant 0 : i32
    %67 = vector.broadcast %c0_i32_22 : i32 to vector<16x16xi32>
    %68 = arith.cmpi ne, %66, %67 : vector<16x16xi32>
    %c0_i32_23 = arith.constant 0 : i32
    %69 = vector.broadcast %c0_i32_23 : i32 to vector<16x16xi32>
    %70 = arith.cmpi slt, %66, %69 : vector<16x16xi32>
    %c0_i32_24 = arith.constant 0 : i32
    %71 = arith.cmpi slt, %64, %c0_i32_24 : i32
    %72 = vector.broadcast %71 : i1 to vector<16x16xi1>
    %73 = vector.broadcast %72 : vector<16x16xi1> to vector<16x16xi1>
    %74 = arith.xori %70, %73 : vector<16x16xi1>
    %75 = arith.andi %74, %68 : vector<16x16xi1>
    %76 = vector.broadcast %64 : i32 to vector<16x16xi32>
    %77 = arith.addi %66, %76 : vector<16x16xi32>
    %78 = arith.select %75, %77, %66 : vector<16x16xi1>, vector<16x16xi32>
    %79 = arith.cmpi eq, %62, %78 : vector<16x16xi32>
    %cst_25 = arith.constant 0.000000e+00 : f32
    %cst_26 = arith.constant -1.000000e+30 : f32
    %80 = vector.broadcast %cst_25 : f32 to vector<16x16xf32>
    %81 = vector.broadcast %cst_26 : f32 to vector<16x16xf32>
    %82 = arith.select %79, %80, %81 : vector<16x16xi1>, vector<16x16xf32>
    %c0_27 = arith.constant 0 : index
    %c0_28 = arith.constant 0 : index
    %c0_29 = arith.constant 0 : index
    %83 = vector.load %arg1[%c0_27, %c0_28, %c0_29] : memref<2x136x128xf32, #tpu.memory_space<vmem>>, vector<1x32x96xf32>
    %84 = vector.shape_cast %83 : vector<1x32x96xf32> to vector<32x96xf32>
    %85 = arith.truncf %84 : vector<32x96xf32> to vector<32x96xbf16>
    %c0_30 = arith.constant 0 : index
    %c128 = arith.constant 128 : index
    %c0_31 = arith.constant 0 : index
    %86 = vector.load %arg1[%c0_30, %c128, %c0_31] : memref<2x136x128xf32, #tpu.memory_space<vmem>>, vector<1x1x96xf32>
    %87 = vector.shape_cast %86 : vector<1x1x96xf32> to vector<1x96xf32>
    %c0_32 = arith.constant 0 : index
    %c32 = arith.constant 32 : index
    %c0_33 = arith.constant 0 : index
    %88 = vector.load %arg1[%c0_32, %c32, %c0_33] : memref<2x136x128xf32, #tpu.memory_space<vmem>>, vector<1x32x32xf32>
    %89 = vector.shape_cast %88 : vector<1x32x32xf32> to vector<32x32xf32>
    %90 = arith.truncf %89 : vector<32x32xf32> to vector<32x32xbf16>
    %c0_34 = arith.constant 0 : index
    %c131 = arith.constant 131 : index
    %c0_35 = arith.constant 0 : index
    %91 = vector.load %arg1[%c0_34, %c131, %c0_35] : memref<2x136x128xf32, #tpu.memory_space<vmem>>, vector<1x1x32xf32>
    %92 = vector.shape_cast %91 : vector<1x1x32xf32> to vector<1x32xf32>
    %c0_36 = arith.constant 0 : index
    %c132 = arith.constant 132 : index
    %c0_37 = arith.constant 0 : index
    %93 = vector.load %arg1[%c0_36, %c132, %c0_37] : memref<2x136x128xf32, #tpu.memory_space<vmem>>, vector<1x1x32xf32>
    %94 = vector.shape_cast %93 : vector<1x1x32xf32> to vector<1x32xf32>
    %c0_38 = arith.constant 0 : index
    %c133 = arith.constant 133 : index
    %c0_39 = arith.constant 0 : index
    %95 = vector.load %arg1[%c0_38, %c133, %c0_39] : memref<2x136x128xf32, #tpu.memory_space<vmem>>, vector<1x1x32xf32>
    %96 = vector.shape_cast %95 : vector<1x1x32xf32> to vector<1x32xf32>
    %c0_40 = arith.constant 0 : index
    %c134 = arith.constant 134 : index
    %c0_41 = arith.constant 0 : index
    %97 = vector.load %arg1[%c0_40, %c134, %c0_41] : memref<2x136x128xf32, #tpu.memory_space<vmem>>, vector<1x1x32xf32>
    %98 = vector.shape_cast %97 : vector<1x1x32xf32> to vector<1x32xf32>
    %c0_42 = arith.constant 0 : index
    %c135 = arith.constant 135 : index
    %c0_43 = arith.constant 0 : index
    %99 = vector.load %arg1[%c0_42, %c135, %c0_43] : memref<2x136x128xf32, #tpu.memory_space<vmem>>, vector<1x1x32xf32>
    %100 = vector.shape_cast %99 : vector<1x1x32xf32> to vector<1x32xf32>
    %c0_44 = arith.constant 0 : index
    %c64 = arith.constant 64 : index
    %c0_45 = arith.constant 0 : index
    %101 = vector.load %arg1[%c0_44, %c64, %c0_45] : memref<2x136x128xf32, #tpu.memory_space<vmem>>, vector<1x32x128xf32>
    %102 = vector.shape_cast %101 : vector<1x32x128xf32> to vector<32x128xf32>
    %103 = arith.truncf %102 : vector<32x128xf32> to vector<32x128xbf16>
    %c0_46 = arith.constant 0 : index
    %c96 = arith.constant 96 : index
    %c0_47 = arith.constant 0 : index
    %104 = vector.load %arg1[%c0_46, %c96, %c0_47] : memref<2x136x128xf32, #tpu.memory_space<vmem>>, vector<1x32x128xf32>
    %105 = vector.shape_cast %104 : vector<1x32x128xf32> to vector<32x128xf32>
    %106 = arith.truncf %105 : vector<32x128xf32> to vector<32x128xbf16>
    %c0_48 = arith.constant 0 : index
    %c129 = arith.constant 129 : index
    %c0_49 = arith.constant 0 : index
    %107 = vector.load %arg1[%c0_48, %c129, %c0_49] : memref<2x136x128xf32, #tpu.memory_space<vmem>>, vector<1x1x128xf32>
    %108 = vector.shape_cast %107 : vector<1x1x128xf32> to vector<1x128xf32>
    %c0_50 = arith.constant 0 : index
    %c130 = arith.constant 130 : index
    %c0_51 = arith.constant 0 : index
    %109 = vector.load %arg1[%c0_50, %c130, %c0_51] : memref<2x136x128xf32, #tpu.memory_space<vmem>>, vector<1x1x32xf32>
    %110 = vector.shape_cast %109 : vector<1x1x32xf32> to vector<1x32xf32>
    %111 = arith.truncf %44 : vector<16x32xf32> to vector<16x32xbf16>
    %cst_52 = arith.constant dense<0.000000e+00> : vector<16x96xf32>
    %112 = tpu.matmul %111, %85, %cst_52 {dimension_numbers = #tpu.dot_dimension_numbers<[1], [0], [0], [1], [0, 0, 1, 1], [], []>} : vector<16x32xbf16>, vector<32x96xbf16>, vector<16x96xf32> -> vector<16x96xf32>
    %113 = vector.broadcast %87 : vector<1x96xf32> to vector<16x96xf32>
    %114 = arith.addf %112, %113 : vector<16x96xf32>
    %115 = arith.truncf %114 : vector<16x96xf32> to vector<16x96xbf16>
    %116 = vector.extract_strided_slice %115 {offsets = [0, 0], sizes = [16, 8], strides = [1, 1]} : vector<16x96xbf16> to vector<16x8xbf16>
    %117 = vector.extract_strided_slice %115 {offsets = [0, 32], sizes = [16, 8], strides = [1, 1]} : vector<16x96xbf16> to vector<16x8xbf16>
    %118 = vector.extract_strided_slice %115 {offsets = [0, 64], sizes = [16, 8], strides = [1, 1]} : vector<16x96xbf16> to vector<16x8xbf16>
    %cst_53 = arith.constant dense<0.000000e+00> : vector<16x16xf32>
    %119 = tpu.matmul %116, %117, %cst_53 {dimension_numbers = #tpu.dot_dimension_numbers<[1], [1], [0], [0], [0, 0, 1, 0], [], []>} : vector<16x8xbf16>, vector<16x8xbf16>, vector<16x16xf32> -> vector<16x16xf32>
    %cst_54 = arith.constant 0.353553385 : f32
    %120 = vector.broadcast %cst_54 : f32 to vector<16x16xf32>
    %121 = arith.mulf %119, %120 : vector<16x16xf32>
    %122 = arith.addf %121, %82 : vector<16x16xf32>
    %cst_55 = arith.constant dense<0xFF800000> : vector<16xf32>
    %123 = vector.multi_reduction <maximumf>, %122, %cst_55 [1] : vector<16x16xf32> to vector<16xf32>
    %124 = vector.shape_cast %123 : vector<16xf32> to vector<16x1xf32>
    %125 = vector.broadcast %124 : vector<16x1xf32> to vector<16x16xf32>
    %126 = arith.subf %122, %125 : vector<16x16xf32>
    %127 = math.exp %126 : vector<16x16xf32>
    %cst_56 = arith.constant dense<0.000000e+00> : vector<16xf32>
    %128 = vector.multi_reduction <add>, %127, %cst_56 [1] : vector<16x16xf32> to vector<16xf32>
    %129 = vector.shape_cast %128 : vector<16xf32> to vector<16x1xf32>
    %130 = tpu.reciprocal %129 {approx = true} : vector<16x1xf32> -> vector<16x1xf32>
    %131 = vector.broadcast %130 : vector<16x1xf32> to vector<16x16xf32>
    %132 = arith.mulf %127, %131 : vector<16x16xf32>
    %133 = arith.truncf %132 : vector<16x16xf32> to vector<16x16xbf16>
    %cst_57 = arith.constant dense<0.000000e+00> : vector<16x8xf32>
    %134 = tpu.matmul %133, %118, %cst_57 {dimension_numbers = #tpu.dot_dimension_numbers<[1], [0], [0], [1], [0, 0, 1, 1], [], []>} : vector<16x16xbf16>, vector<16x8xbf16>, vector<16x8xf32> -> vector<16x8xf32>
    %135 = vector.extract_strided_slice %115 {offsets = [0, 8], sizes = [16, 8], strides = [1, 1]} : vector<16x96xbf16> to vector<16x8xbf16>
    %136 = vector.extract_strided_slice %115 {offsets = [0, 40], sizes = [16, 8], strides = [1, 1]} : vector<16x96xbf16> to vector<16x8xbf16>
    %137 = vector.extract_strided_slice %115 {offsets = [0, 72], sizes = [16, 8], strides = [1, 1]} : vector<16x96xbf16> to vector<16x8xbf16>
    %cst_58 = arith.constant dense<0.000000e+00> : vector<16x16xf32>
    %138 = tpu.matmul %135, %136, %cst_58 {dimension_numbers = #tpu.dot_dimension_numbers<[1], [1], [0], [0], [0, 0, 1, 0], [], []>} : vector<16x8xbf16>, vector<16x8xbf16>, vector<16x16xf32> -> vector<16x16xf32>
    %cst_59 = arith.constant 0.353553385 : f32
    %139 = vector.broadcast %cst_59 : f32 to vector<16x16xf32>
    %140 = arith.mulf %138, %139 : vector<16x16xf32>
    %141 = arith.addf %140, %82 : vector<16x16xf32>
    %cst_60 = arith.constant dense<0xFF800000> : vector<16xf32>
    %142 = vector.multi_reduction <maximumf>, %141, %cst_60 [1] : vector<16x16xf32> to vector<16xf32>
    %143 = vector.shape_cast %142 : vector<16xf32> to vector<16x1xf32>
    %144 = vector.broadcast %143 : vector<16x1xf32> to vector<16x16xf32>
    %145 = arith.subf %141, %144 : vector<16x16xf32>
    %146 = math.exp %145 : vector<16x16xf32>
    %cst_61 = arith.constant dense<0.000000e+00> : vector<16xf32>
    %147 = vector.multi_reduction <add>, %146, %cst_61 [1] : vector<16x16xf32> to vector<16xf32>
    %148 = vector.shape_cast %147 : vector<16xf32> to vector<16x1xf32>
    %149 = tpu.reciprocal %148 {approx = true} : vector<16x1xf32> -> vector<16x1xf32>
    %150 = vector.broadcast %149 : vector<16x1xf32> to vector<16x16xf32>
    %151 = arith.mulf %146, %150 : vector<16x16xf32>
    %152 = arith.truncf %151 : vector<16x16xf32> to vector<16x16xbf16>
    %cst_62 = arith.constant dense<0.000000e+00> : vector<16x8xf32>
    %153 = tpu.matmul %152, %137, %cst_62 {dimension_numbers = #tpu.dot_dimension_numbers<[1], [0], [0], [1], [0, 0, 1, 1], [], []>} : vector<16x16xbf16>, vector<16x8xbf16>, vector<16x8xf32> -> vector<16x8xf32>
    %154 = vector.extract_strided_slice %115 {offsets = [0, 16], sizes = [16, 8], strides = [1, 1]} : vector<16x96xbf16> to vector<16x8xbf16>
    %155 = vector.extract_strided_slice %115 {offsets = [0, 48], sizes = [16, 8], strides = [1, 1]} : vector<16x96xbf16> to vector<16x8xbf16>
    %156 = vector.extract_strided_slice %115 {offsets = [0, 80], sizes = [16, 8], strides = [1, 1]} : vector<16x96xbf16> to vector<16x8xbf16>
    %cst_63 = arith.constant dense<0.000000e+00> : vector<16x16xf32>
    %157 = tpu.matmul %154, %155, %cst_63 {dimension_numbers = #tpu.dot_dimension_numbers<[1], [1], [0], [0], [0, 0, 1, 0], [], []>} : vector<16x8xbf16>, vector<16x8xbf16>, vector<16x16xf32> -> vector<16x16xf32>
    %cst_64 = arith.constant 0.353553385 : f32
    %158 = vector.broadcast %cst_64 : f32 to vector<16x16xf32>
    %159 = arith.mulf %157, %158 : vector<16x16xf32>
    %160 = arith.addf %159, %82 : vector<16x16xf32>
    %cst_65 = arith.constant dense<0xFF800000> : vector<16xf32>
    %161 = vector.multi_reduction <maximumf>, %160, %cst_65 [1] : vector<16x16xf32> to vector<16xf32>
    %162 = vector.shape_cast %161 : vector<16xf32> to vector<16x1xf32>
    %163 = vector.broadcast %162 : vector<16x1xf32> to vector<16x16xf32>
    %164 = arith.subf %160, %163 : vector<16x16xf32>
    %165 = math.exp %164 : vector<16x16xf32>
    %cst_66 = arith.constant dense<0.000000e+00> : vector<16xf32>
    %166 = vector.multi_reduction <add>, %165, %cst_66 [1] : vector<16x16xf32> to vector<16xf32>
    %167 = vector.shape_cast %166 : vector<16xf32> to vector<16x1xf32>
    %168 = tpu.reciprocal %167 {approx = true} : vector<16x1xf32> -> vector<16x1xf32>
    %169 = vector.broadcast %168 : vector<16x1xf32> to vector<16x16xf32>
    %170 = arith.mulf %165, %169 : vector<16x16xf32>
    %171 = arith.truncf %170 : vector<16x16xf32> to vector<16x16xbf16>
    %cst_67 = arith.constant dense<0.000000e+00> : vector<16x8xf32>
    %172 = tpu.matmul %171, %156, %cst_67 {dimension_numbers = #tpu.dot_dimension_numbers<[1], [0], [0], [1], [0, 0, 1, 1], [], []>} : vector<16x16xbf16>, vector<16x8xbf16>, vector<16x8xf32> -> vector<16x8xf32>
    %173 = vector.extract_strided_slice %115 {offsets = [0, 24], sizes = [16, 8], strides = [1, 1]} : vector<16x96xbf16> to vector<16x8xbf16>
    %174 = vector.extract_strided_slice %115 {offsets = [0, 56], sizes = [16, 8], strides = [1, 1]} : vector<16x96xbf16> to vector<16x8xbf16>
    %175 = vector.extract_strided_slice %115 {offsets = [0, 88], sizes = [16, 8], strides = [1, 1]} : vector<16x96xbf16> to vector<16x8xbf16>
    %cst_68 = arith.constant dense<0.000000e+00> : vector<16x16xf32>
    %176 = tpu.matmul %173, %174, %cst_68 {dimension_numbers = #tpu.dot_dimension_numbers<[1], [1], [0], [0], [0, 0, 1, 0], [], []>} : vector<16x8xbf16>, vector<16x8xbf16>, vector<16x16xf32> -> vector<16x16xf32>
    %cst_69 = arith.constant 0.353553385 : f32
    %177 = vector.broadcast %cst_69 : f32 to vector<16x16xf32>
    %178 = arith.mulf %176, %177 : vector<16x16xf32>
    %179 = arith.addf %178, %82 : vector<16x16xf32>
    %cst_70 = arith.constant dense<0xFF800000> : vector<16xf32>
    %180 = vector.multi_reduction <maximumf>, %179, %cst_70 [1] : vector<16x16xf32> to vector<16xf32>
    %181 = vector.shape_cast %180 : vector<16xf32> to vector<16x1xf32>
    %182 = vector.broadcast %181 : vector<16x1xf32> to vector<16x16xf32>
    %183 = arith.subf %179, %182 : vector<16x16xf32>
    %184 = math.exp %183 : vector<16x16xf32>
    %cst_71 = arith.constant dense<0.000000e+00> : vector<16xf32>
    %185 = vector.multi_reduction <add>, %184, %cst_71 [1] : vector<16x16xf32> to vector<16xf32>
    %186 = vector.shape_cast %185 : vector<16xf32> to vector<16x1xf32>
    %187 = tpu.reciprocal %186 {approx = true} : vector<16x1xf32> -> vector<16x1xf32>
    %188 = vector.broadcast %187 : vector<16x1xf32> to vector<16x16xf32>
    %189 = arith.mulf %184, %188 : vector<16x16xf32>
    %190 = arith.truncf %189 : vector<16x16xf32> to vector<16x16xbf16>
    %cst_72 = arith.constant dense<0.000000e+00> : vector<16x8xf32>
    %191 = tpu.matmul %190, %175, %cst_72 {dimension_numbers = #tpu.dot_dimension_numbers<[1], [0], [0], [1], [0, 0, 1, 1], [], []>} : vector<16x16xbf16>, vector<16x8xbf16>, vector<16x8xf32> -> vector<16x8xf32>
    %192 = tpu.concatenate %134, %153, %172, %191 in 1 : vector<16x8xf32>, vector<16x8xf32>, vector<16x8xf32>, vector<16x8xf32> -> vector<16x32xf32>
    %193 = arith.truncf %192 : vector<16x32xf32> to vector<16x32xbf16>
    %cst_73 = arith.constant dense<0.000000e+00> : vector<16x32xf32>
    %194 = tpu.matmul %193, %90, %cst_73 {dimension_numbers = #tpu.dot_dimension_numbers<[1], [0], [0], [1], [0, 0, 1, 1], [], []>} : vector<16x32xbf16>, vector<32x32xbf16>, vector<16x32xf32> -> vector<16x32xf32>
    %195 = vector.broadcast %92 : vector<1x32xf32> to vector<16x32xf32>
    %196 = arith.addf %194, %195 : vector<16x32xf32>
    %197 = arith.addf %44, %196 : vector<16x32xf32>
    %cst_74 = arith.constant dense<0.000000e+00> : vector<16xf32>
    %198 = vector.multi_reduction <add>, %197, %cst_74 [1] : vector<16x32xf32> to vector<16xf32>
    %199 = vector.shape_cast %198 : vector<16xf32> to vector<16x1xf32>
    %cst_75 = arith.constant 3.200000e+01 : f32
    %200 = vector.broadcast %cst_75 : f32 to vector<16x1xf32>
    %201 = arith.divf %199, %200 : vector<16x1xf32>
    %202 = vector.broadcast %201 : vector<16x1xf32> to vector<16x32xf32>
    %203 = arith.subf %197, %202 : vector<16x32xf32>
    %204 = arith.mulf %203, %203 : vector<16x32xf32>
    %cst_76 = arith.constant dense<0.000000e+00> : vector<16xf32>
    %205 = vector.multi_reduction <add>, %204, %cst_76 [1] : vector<16x32xf32> to vector<16xf32>
    %206 = vector.shape_cast %205 : vector<16xf32> to vector<16x1xf32>
    %cst_77 = arith.constant 3.200000e+01 : f32
    %207 = vector.broadcast %cst_77 : f32 to vector<16x1xf32>
    %208 = arith.divf %206, %207 : vector<16x1xf32>
    %cst_78 = arith.constant 9.99999974E-6 : f32
    %209 = vector.broadcast %cst_78 : f32 to vector<16x1xf32>
    %210 = arith.addf %208, %209 : vector<16x1xf32>
    %211 = math.rsqrt %210 : vector<16x1xf32>
    %212 = vector.broadcast %211 : vector<16x1xf32> to vector<16x32xf32>
    %213 = arith.mulf %203, %212 : vector<16x32xf32>
    %214 = vector.broadcast %94 : vector<1x32xf32> to vector<16x32xf32>
    %215 = arith.mulf %213, %214 : vector<16x32xf32>
    %216 = vector.broadcast %96 : vector<1x32xf32> to vector<16x32xf32>
    %217 = arith.addf %215, %216 : vector<16x32xf32>
    %218 = arith.truncf %217 : vector<16x32xf32> to vector<16x32xbf16>
    %cst_79 = arith.constant dense<0.000000e+00> : vector<16x128xf32>
    %219 = tpu.matmul %218, %103, %cst_79 {dimension_numbers = #tpu.dot_dimension_numbers<[1], [0], [0], [1], [0, 0, 1, 1], [], []>} : vector<16x32xbf16>, vector<32x128xbf16>, vector<16x128xf32> -> vector<16x128xf32>
    %220 = vector.broadcast %108 : vector<1x128xf32> to vector<16x128xf32>
    %221 = arith.addf %219, %220 : vector<16x128xf32>
    %cst_80 = arith.constant 5.000000e-01 : f32
    %222 = vector.broadcast %cst_80 : f32 to vector<16x128xf32>
    %223 = arith.mulf %222, %221 : vector<16x128xf32>
    %cst_81 = arith.constant 4.471500e-02 : f32
    %224 = vector.broadcast %cst_81 : f32 to vector<16x128xf32>
    %225 = arith.mulf %224, %221 : vector<16x128xf32>
    %226 = arith.mulf %225, %221 : vector<16x128xf32>
    %227 = arith.mulf %226, %221 : vector<16x128xf32>
    %228 = arith.addf %221, %227 : vector<16x128xf32>
    %cst_82 = arith.constant 0.797884583 : f32
    %229 = vector.broadcast %cst_82 : f32 to vector<16x128xf32>
    %230 = arith.mulf %229, %228 : vector<16x128xf32>
    %231 = math.tanh %230 : vector<16x128xf32>
    %cst_83 = arith.constant 1.000000e+00 : f32
    %232 = vector.broadcast %cst_83 : f32 to vector<16x128xf32>
    %233 = arith.addf %232, %231 : vector<16x128xf32>
    %234 = arith.mulf %223, %233 : vector<16x128xf32>
    %235 = arith.truncf %234 : vector<16x128xf32> to vector<16x128xbf16>
    %cst_84 = arith.constant dense<0.000000e+00> : vector<16x32xf32>
    %236 = tpu.matmul %235, %106, %cst_84 {dimension_numbers = #tpu.dot_dimension_numbers<[1], [1], [0], [0], [0, 0, 1, 0], [], []>} : vector<16x128xbf16>, vector<32x128xbf16>, vector<16x32xf32> -> vector<16x32xf32>
    %237 = vector.broadcast %110 : vector<1x32xf32> to vector<16x32xf32>
    %238 = arith.addf %236, %237 : vector<16x32xf32>
    %239 = arith.addf %217, %238 : vector<16x32xf32>
    %cst_85 = arith.constant dense<0.000000e+00> : vector<16xf32>
    %240 = vector.multi_reduction <add>, %239, %cst_85 [1] : vector<16x32xf32> to vector<16xf32>
    %241 = vector.shape_cast %240 : vector<16xf32> to vector<16x1xf32>
    %cst_86 = arith.constant 3.200000e+01 : f32
    %242 = vector.broadcast %cst_86 : f32 to vector<16x1xf32>
    %243 = arith.divf %241, %242 : vector<16x1xf32>
    %244 = vector.broadcast %243 : vector<16x1xf32> to vector<16x32xf32>
    %245 = arith.subf %239, %244 : vector<16x32xf32>
    %246 = arith.mulf %245, %245 : vector<16x32xf32>
    %cst_87 = arith.constant dense<0.000000e+00> : vector<16xf32>
    %247 = vector.multi_reduction <add>, %246, %cst_87 [1] : vector<16x32xf32> to vector<16xf32>
    %248 = vector.shape_cast %247 : vector<16xf32> to vector<16x1xf32>
    %cst_88 = arith.constant 3.200000e+01 : f32
    %249 = vector.broadcast %cst_88 : f32 to vector<16x1xf32>
    %250 = arith.divf %248, %249 : vector<16x1xf32>
    %cst_89 = arith.constant 9.99999974E-6 : f32
    %251 = vector.broadcast %cst_89 : f32 to vector<16x1xf32>
    %252 = arith.addf %250, %251 : vector<16x1xf32>
    %253 = math.rsqrt %252 : vector<16x1xf32>
    %254 = vector.broadcast %253 : vector<16x1xf32> to vector<16x32xf32>
    %255 = arith.mulf %245, %254 : vector<16x32xf32>
    %256 = vector.broadcast %98 : vector<1x32xf32> to vector<16x32xf32>
    %257 = arith.mulf %255, %256 : vector<16x32xf32>
    %258 = vector.broadcast %100 : vector<1x32xf32> to vector<16x32xf32>
    %259 = arith.addf %257, %258 : vector<16x32xf32>
    %c1_90 = arith.constant 1 : index
    %c0_91 = arith.constant 0 : index
    %c0_92 = arith.constant 0 : index
    %260 = vector.load %arg1[%c1_90, %c0_91, %c0_92] : memref<2x136x128xf32, #tpu.memory_space<vmem>>, vector<1x32x96xf32>
    %261 = vector.shape_cast %260 : vector<1x32x96xf32> to vector<32x96xf32>
    %262 = arith.truncf %261 : vector<32x96xf32> to vector<32x96xbf16>
    %c1_93 = arith.constant 1 : index
    %c128_94 = arith.constant 128 : index
    %c0_95 = arith.constant 0 : index
    %263 = vector.load %arg1[%c1_93, %c128_94, %c0_95] : memref<2x136x128xf32, #tpu.memory_space<vmem>>, vector<1x1x96xf32>
    %264 = vector.shape_cast %263 : vector<1x1x96xf32> to vector<1x96xf32>
    %c1_96 = arith.constant 1 : index
    %c32_97 = arith.constant 32 : index
    %c0_98 = arith.constant 0 : index
    %265 = vector.load %arg1[%c1_96, %c32_97, %c0_98] : memref<2x136x128xf32, #tpu.memory_space<vmem>>, vector<1x32x32xf32>
    %266 = vector.shape_cast %265 : vector<1x32x32xf32> to vector<32x32xf32>
    %267 = arith.truncf %266 : vector<32x32xf32> to vector<32x32xbf16>
    %c1_99 = arith.constant 1 : index
    %c131_100 = arith.constant 131 : index
    %c0_101 = arith.constant 0 : index
    %268 = vector.load %arg1[%c1_99, %c131_100, %c0_101] : memref<2x136x128xf32, #tpu.memory_space<vmem>>, vector<1x1x32xf32>
    %269 = vector.shape_cast %268 : vector<1x1x32xf32> to vector<1x32xf32>
    %c1_102 = arith.constant 1 : index
    %c132_103 = arith.constant 132 : index
    %c0_104 = arith.constant 0 : index
    %270 = vector.load %arg1[%c1_102, %c132_103, %c0_104] : memref<2x136x128xf32, #tpu.memory_space<vmem>>, vector<1x1x32xf32>
    %271 = vector.shape_cast %270 : vector<1x1x32xf32> to vector<1x32xf32>
    %c1_105 = arith.constant 1 : index
    %c133_106 = arith.constant 133 : index
    %c0_107 = arith.constant 0 : index
    %272 = vector.load %arg1[%c1_105, %c133_106, %c0_107] : memref<2x136x128xf32, #tpu.memory_space<vmem>>, vector<1x1x32xf32>
    %273 = vector.shape_cast %272 : vector<1x1x32xf32> to vector<1x32xf32>
    %c1_108 = arith.constant 1 : index
    %c134_109 = arith.constant 134 : index
    %c0_110 = arith.constant 0 : index
    %274 = vector.load %arg1[%c1_108, %c134_109, %c0_110] : memref<2x136x128xf32, #tpu.memory_space<vmem>>, vector<1x1x32xf32>
    %275 = vector.shape_cast %274 : vector<1x1x32xf32> to vector<1x32xf32>
    %c1_111 = arith.constant 1 : index
    %c135_112 = arith.constant 135 : index
    %c0_113 = arith.constant 0 : index
    %276 = vector.load %arg1[%c1_111, %c135_112, %c0_113] : memref<2x136x128xf32, #tpu.memory_space<vmem>>, vector<1x1x32xf32>
    %277 = vector.shape_cast %276 : vector<1x1x32xf32> to vector<1x32xf32>
    %c1_114 = arith.constant 1 : index
    %c64_115 = arith.constant 64 : index
    %c0_116 = arith.constant 0 : index
    %278 = vector.load %arg1[%c1_114, %c64_115, %c0_116] : memref<2x136x128xf32, #tpu.memory_space<vmem>>, vector<1x32x128xf32>
    %279 = vector.shape_cast %278 : vector<1x32x128xf32> to vector<32x128xf32>
    %280 = arith.truncf %279 : vector<32x128xf32> to vector<32x128xbf16>
    %c1_117 = arith.constant 1 : index
    %c96_118 = arith.constant 96 : index
    %c0_119 = arith.constant 0 : index
    %281 = vector.load %arg1[%c1_117, %c96_118, %c0_119] : memref<2x136x128xf32, #tpu.memory_space<vmem>>, vector<1x32x128xf32>
    %282 = vector.shape_cast %281 : vector<1x32x128xf32> to vector<32x128xf32>
    %283 = arith.truncf %282 : vector<32x128xf32> to vector<32x128xbf16>
    %c1_120 = arith.constant 1 : index
    %c129_121 = arith.constant 129 : index
    %c0_122 = arith.constant 0 : index
    %284 = vector.load %arg1[%c1_120, %c129_121, %c0_122] : memref<2x136x128xf32, #tpu.memory_space<vmem>>, vector<1x1x128xf32>
    %285 = vector.shape_cast %284 : vector<1x1x128xf32> to vector<1x128xf32>
    %c1_123 = arith.constant 1 : index
    %c130_124 = arith.constant 130 : index
    %c0_125 = arith.constant 0 : index
    %286 = vector.load %arg1[%c1_123, %c130_124, %c0_125] : memref<2x136x128xf32, #tpu.memory_space<vmem>>, vector<1x1x32xf32>
    %287 = vector.shape_cast %286 : vector<1x1x32xf32> to vector<1x32xf32>
    %288 = arith.truncf %259 : vector<16x32xf32> to vector<16x32xbf16>
    %cst_126 = arith.constant dense<0.000000e+00> : vector<16x96xf32>
    %289 = tpu.matmul %288, %262, %cst_126 {dimension_numbers = #tpu.dot_dimension_numbers<[1], [0], [0], [1], [0, 0, 1, 1], [], []>} : vector<16x32xbf16>, vector<32x96xbf16>, vector<16x96xf32> -> vector<16x96xf32>
    %290 = vector.broadcast %264 : vector<1x96xf32> to vector<16x96xf32>
    %291 = arith.addf %289, %290 : vector<16x96xf32>
    %292 = arith.truncf %291 : vector<16x96xf32> to vector<16x96xbf16>
    %293 = vector.extract_strided_slice %292 {offsets = [0, 0], sizes = [16, 8], strides = [1, 1]} : vector<16x96xbf16> to vector<16x8xbf16>
    %294 = vector.extract_strided_slice %292 {offsets = [0, 32], sizes = [16, 8], strides = [1, 1]} : vector<16x96xbf16> to vector<16x8xbf16>
    %295 = vector.extract_strided_slice %292 {offsets = [0, 64], sizes = [16, 8], strides = [1, 1]} : vector<16x96xbf16> to vector<16x8xbf16>
    %cst_127 = arith.constant dense<0.000000e+00> : vector<16x16xf32>
    %296 = tpu.matmul %293, %294, %cst_127 {dimension_numbers = #tpu.dot_dimension_numbers<[1], [1], [0], [0], [0, 0, 1, 0], [], []>} : vector<16x8xbf16>, vector<16x8xbf16>, vector<16x16xf32> -> vector<16x16xf32>
    %cst_128 = arith.constant 0.353553385 : f32
    %297 = vector.broadcast %cst_128 : f32 to vector<16x16xf32>
    %298 = arith.mulf %296, %297 : vector<16x16xf32>
    %299 = arith.addf %298, %82 : vector<16x16xf32>
    %cst_129 = arith.constant dense<0xFF800000> : vector<16xf32>
    %300 = vector.multi_reduction <maximumf>, %299, %cst_129 [1] : vector<16x16xf32> to vector<16xf32>
    %301 = vector.shape_cast %300 : vector<16xf32> to vector<16x1xf32>
    %302 = vector.broadcast %301 : vector<16x1xf32> to vector<16x16xf32>
    %303 = arith.subf %299, %302 : vector<16x16xf32>
    %304 = math.exp %303 : vector<16x16xf32>
    %cst_130 = arith.constant dense<0.000000e+00> : vector<16xf32>
    %305 = vector.multi_reduction <add>, %304, %cst_130 [1] : vector<16x16xf32> to vector<16xf32>
    %306 = vector.shape_cast %305 : vector<16xf32> to vector<16x1xf32>
    %307 = tpu.reciprocal %306 {approx = true} : vector<16x1xf32> -> vector<16x1xf32>
    %308 = vector.broadcast %307 : vector<16x1xf32> to vector<16x16xf32>
    %309 = arith.mulf %304, %308 : vector<16x16xf32>
    %310 = arith.truncf %309 : vector<16x16xf32> to vector<16x16xbf16>
    %cst_131 = arith.constant dense<0.000000e+00> : vector<16x8xf32>
    %311 = tpu.matmul %310, %295, %cst_131 {dimension_numbers = #tpu.dot_dimension_numbers<[1], [0], [0], [1], [0, 0, 1, 1], [], []>} : vector<16x16xbf16>, vector<16x8xbf16>, vector<16x8xf32> -> vector<16x8xf32>
    %312 = vector.extract_strided_slice %292 {offsets = [0, 8], sizes = [16, 8], strides = [1, 1]} : vector<16x96xbf16> to vector<16x8xbf16>
    %313 = vector.extract_strided_slice %292 {offsets = [0, 40], sizes = [16, 8], strides = [1, 1]} : vector<16x96xbf16> to vector<16x8xbf16>
    %314 = vector.extract_strided_slice %292 {offsets = [0, 72], sizes = [16, 8], strides = [1, 1]} : vector<16x96xbf16> to vector<16x8xbf16>
    %cst_132 = arith.constant dense<0.000000e+00> : vector<16x16xf32>
    %315 = tpu.matmul %312, %313, %cst_132 {dimension_numbers = #tpu.dot_dimension_numbers<[1], [1], [0], [0], [0, 0, 1, 0], [], []>} : vector<16x8xbf16>, vector<16x8xbf16>, vector<16x16xf32> -> vector<16x16xf32>
    %cst_133 = arith.constant 0.353553385 : f32
    %316 = vector.broadcast %cst_133 : f32 to vector<16x16xf32>
    %317 = arith.mulf %315, %316 : vector<16x16xf32>
    %318 = arith.addf %317, %82 : vector<16x16xf32>
    %cst_134 = arith.constant dense<0xFF800000> : vector<16xf32>
    %319 = vector.multi_reduction <maximumf>, %318, %cst_134 [1] : vector<16x16xf32> to vector<16xf32>
    %320 = vector.shape_cast %319 : vector<16xf32> to vector<16x1xf32>
    %321 = vector.broadcast %320 : vector<16x1xf32> to vector<16x16xf32>
    %322 = arith.subf %318, %321 : vector<16x16xf32>
    %323 = math.exp %322 : vector<16x16xf32>
    %cst_135 = arith.constant dense<0.000000e+00> : vector<16xf32>
    %324 = vector.multi_reduction <add>, %323, %cst_135 [1] : vector<16x16xf32> to vector<16xf32>
    %325 = vector.shape_cast %324 : vector<16xf32> to vector<16x1xf32>
    %326 = tpu.reciprocal %325 {approx = true} : vector<16x1xf32> -> vector<16x1xf32>
    %327 = vector.broadcast %326 : vector<16x1xf32> to vector<16x16xf32>
    %328 = arith.mulf %323, %327 : vector<16x16xf32>
    %329 = arith.truncf %328 : vector<16x16xf32> to vector<16x16xbf16>
    %cst_136 = arith.constant dense<0.000000e+00> : vector<16x8xf32>
    %330 = tpu.matmul %329, %314, %cst_136 {dimension_numbers = #tpu.dot_dimension_numbers<[1], [0], [0], [1], [0, 0, 1, 1], [], []>} : vector<16x16xbf16>, vector<16x8xbf16>, vector<16x8xf32> -> vector<16x8xf32>
    %331 = vector.extract_strided_slice %292 {offsets = [0, 16], sizes = [16, 8], strides = [1, 1]} : vector<16x96xbf16> to vector<16x8xbf16>
    %332 = vector.extract_strided_slice %292 {offsets = [0, 48], sizes = [16, 8], strides = [1, 1]} : vector<16x96xbf16> to vector<16x8xbf16>
    %333 = vector.extract_strided_slice %292 {offsets = [0, 80], sizes = [16, 8], strides = [1, 1]} : vector<16x96xbf16> to vector<16x8xbf16>
    %cst_137 = arith.constant dense<0.000000e+00> : vector<16x16xf32>
    %334 = tpu.matmul %331, %332, %cst_137 {dimension_numbers = #tpu.dot_dimension_numbers<[1], [1], [0], [0], [0, 0, 1, 0], [], []>} : vector<16x8xbf16>, vector<16x8xbf16>, vector<16x16xf32> -> vector<16x16xf32>
    %cst_138 = arith.constant 0.353553385 : f32
    %335 = vector.broadcast %cst_138 : f32 to vector<16x16xf32>
    %336 = arith.mulf %334, %335 : vector<16x16xf32>
    %337 = arith.addf %336, %82 : vector<16x16xf32>
    %cst_139 = arith.constant dense<0xFF800000> : vector<16xf32>
    %338 = vector.multi_reduction <maximumf>, %337, %cst_139 [1] : vector<16x16xf32> to vector<16xf32>
    %339 = vector.shape_cast %338 : vector<16xf32> to vector<16x1xf32>
    %340 = vector.broadcast %339 : vector<16x1xf32> to vector<16x16xf32>
    %341 = arith.subf %337, %340 : vector<16x16xf32>
    %342 = math.exp %341 : vector<16x16xf32>
    %cst_140 = arith.constant dense<0.000000e+00> : vector<16xf32>
    %343 = vector.multi_reduction <add>, %342, %cst_140 [1] : vector<16x16xf32> to vector<16xf32>
    %344 = vector.shape_cast %343 : vector<16xf32> to vector<16x1xf32>
    %345 = tpu.reciprocal %344 {approx = true} : vector<16x1xf32> -> vector<16x1xf32>
    %346 = vector.broadcast %345 : vector<16x1xf32> to vector<16x16xf32>
    %347 = arith.mulf %342, %346 : vector<16x16xf32>
    %348 = arith.truncf %347 : vector<16x16xf32> to vector<16x16xbf16>
    %cst_141 = arith.constant dense<0.000000e+00> : vector<16x8xf32>
    %349 = tpu.matmul %348, %333, %cst_141 {dimension_numbers = #tpu.dot_dimension_numbers<[1], [0], [0], [1], [0, 0, 1, 1], [], []>} : vector<16x16xbf16>, vector<16x8xbf16>, vector<16x8xf32> -> vector<16x8xf32>
    %350 = vector.extract_strided_slice %292 {offsets = [0, 24], sizes = [16, 8], strides = [1, 1]} : vector<16x96xbf16> to vector<16x8xbf16>
    %351 = vector.extract_strided_slice %292 {offsets = [0, 56], sizes = [16, 8], strides = [1, 1]} : vector<16x96xbf16> to vector<16x8xbf16>
    %352 = vector.extract_strided_slice %292 {offsets = [0, 88], sizes = [16, 8], strides = [1, 1]} : vector<16x96xbf16> to vector<16x8xbf16>
    %cst_142 = arith.constant dense<0.000000e+00> : vector<16x16xf32>
    %353 = tpu.matmul %350, %351, %cst_142 {dimension_numbers = #tpu.dot_dimension_numbers<[1], [1], [0], [0], [0, 0, 1, 0], [], []>} : vector<16x8xbf16>, vector<16x8xbf16>, vector<16x16xf32> -> vector<16x16xf32>
    %cst_143 = arith.constant 0.353553385 : f32
    %354 = vector.broadcast %cst_143 : f32 to vector<16x16xf32>
    %355 = arith.mulf %353, %354 : vector<16x16xf32>
    %356 = arith.addf %355, %82 : vector<16x16xf32>
    %cst_144 = arith.constant dense<0xFF800000> : vector<16xf32>
    %357 = vector.multi_reduction <maximumf>, %356, %cst_144 [1] : vector<16x16xf32> to vector<16xf32>
    %358 = vector.shape_cast %357 : vector<16xf32> to vector<16x1xf32>
    %359 = vector.broadcast %358 : vector<16x1xf32> to vector<16x16xf32>
    %360 = arith.subf %356, %359 : vector<16x16xf32>
    %361 = math.exp %360 : vector<16x16xf32>
    %cst_145 = arith.constant dense<0.000000e+00> : vector<16xf32>
    %362 = vector.multi_reduction <add>, %361, %cst_145 [1] : vector<16x16xf32> to vector<16xf32>
    %363 = vector.shape_cast %362 : vector<16xf32> to vector<16x1xf32>
    %364 = tpu.reciprocal %363 {approx = true} : vector<16x1xf32> -> vector<16x1xf32>
    %365 = vector.broadcast %364 : vector<16x1xf32> to vector<16x16xf32>
    %366 = arith.mulf %361, %365 : vector<16x16xf32>
    %367 = arith.truncf %366 : vector<16x16xf32> to vector<16x16xbf16>
    %cst_146 = arith.constant dense<0.000000e+00> : vector<16x8xf32>
    %368 = tpu.matmul %367, %352, %cst_146 {dimension_numbers = #tpu.dot_dimension_numbers<[1], [0], [0], [1], [0, 0, 1, 1], [], []>} : vector<16x16xbf16>, vector<16x8xbf16>, vector<16x8xf32> -> vector<16x8xf32>
    %369 = tpu.concatenate %311, %330, %349, %368 in 1 : vector<16x8xf32>, vector<16x8xf32>, vector<16x8xf32>, vector<16x8xf32> -> vector<16x32xf32>
    %370 = arith.truncf %369 : vector<16x32xf32> to vector<16x32xbf16>
    %cst_147 = arith.constant dense<0.000000e+00> : vector<16x32xf32>
    %371 = tpu.matmul %370, %267, %cst_147 {dimension_numbers = #tpu.dot_dimension_numbers<[1], [0], [0], [1], [0, 0, 1, 1], [], []>} : vector<16x32xbf16>, vector<32x32xbf16>, vector<16x32xf32> -> vector<16x32xf32>
    %372 = vector.broadcast %269 : vector<1x32xf32> to vector<16x32xf32>
    %373 = arith.addf %371, %372 : vector<16x32xf32>
    %374 = arith.addf %259, %373 : vector<16x32xf32>
    %cst_148 = arith.constant dense<0.000000e+00> : vector<16xf32>
    %375 = vector.multi_reduction <add>, %374, %cst_148 [1] : vector<16x32xf32> to vector<16xf32>
    %376 = vector.shape_cast %375 : vector<16xf32> to vector<16x1xf32>
    %cst_149 = arith.constant 3.200000e+01 : f32
    %377 = vector.broadcast %cst_149 : f32 to vector<16x1xf32>
    %378 = arith.divf %376, %377 : vector<16x1xf32>
    %379 = vector.broadcast %378 : vector<16x1xf32> to vector<16x32xf32>
    %380 = arith.subf %374, %379 : vector<16x32xf32>
    %381 = arith.mulf %380, %380 : vector<16x32xf32>
    %cst_150 = arith.constant dense<0.000000e+00> : vector<16xf32>
    %382 = vector.multi_reduction <add>, %381, %cst_150 [1] : vector<16x32xf32> to vector<16xf32>
    %383 = vector.shape_cast %382 : vector<16xf32> to vector<16x1xf32>
    %cst_151 = arith.constant 3.200000e+01 : f32
    %384 = vector.broadcast %cst_151 : f32 to vector<16x1xf32>
    %385 = arith.divf %383, %384 : vector<16x1xf32>
    %cst_152 = arith.constant 9.99999974E-6 : f32
    %386 = vector.broadcast %cst_152 : f32 to vector<16x1xf32>
    %387 = arith.addf %385, %386 : vector<16x1xf32>
    %388 = math.rsqrt %387 : vector<16x1xf32>
    %389 = vector.broadcast %388 : vector<16x1xf32> to vector<16x32xf32>
    %390 = arith.mulf %380, %389 : vector<16x32xf32>
    %391 = vector.broadcast %271 : vector<1x32xf32> to vector<16x32xf32>
    %392 = arith.mulf %390, %391 : vector<16x32xf32>
    %393 = vector.broadcast %273 : vector<1x32xf32> to vector<16x32xf32>
    %394 = arith.addf %392, %393 : vector<16x32xf32>
    %395 = arith.truncf %394 : vector<16x32xf32> to vector<16x32xbf16>
    %cst_153 = arith.constant dense<0.000000e+00> : vector<16x128xf32>
    %396 = tpu.matmul %395, %280, %cst_153 {dimension_numbers = #tpu.dot_dimension_numbers<[1], [0], [0], [1], [0, 0, 1, 1], [], []>} : vector<16x32xbf16>, vector<32x128xbf16>, vector<16x128xf32> -> vector<16x128xf32>
    %397 = vector.broadcast %285 : vector<1x128xf32> to vector<16x128xf32>
    %398 = arith.addf %396, %397 : vector<16x128xf32>
    %cst_154 = arith.constant 5.000000e-01 : f32
    %399 = vector.broadcast %cst_154 : f32 to vector<16x128xf32>
    %400 = arith.mulf %399, %398 : vector<16x128xf32>
    %cst_155 = arith.constant 4.471500e-02 : f32
    %401 = vector.broadcast %cst_155 : f32 to vector<16x128xf32>
    %402 = arith.mulf %401, %398 : vector<16x128xf32>
    %403 = arith.mulf %402, %398 : vector<16x128xf32>
    %404 = arith.mulf %403, %398 : vector<16x128xf32>
    %405 = arith.addf %398, %404 : vector<16x128xf32>
    %cst_156 = arith.constant 0.797884583 : f32
    %406 = vector.broadcast %cst_156 : f32 to vector<16x128xf32>
    %407 = arith.mulf %406, %405 : vector<16x128xf32>
    %408 = math.tanh %407 : vector<16x128xf32>
    %cst_157 = arith.constant 1.000000e+00 : f32
    %409 = vector.broadcast %cst_157 : f32 to vector<16x128xf32>
    %410 = arith.addf %409, %408 : vector<16x128xf32>
    %411 = arith.mulf %400, %410 : vector<16x128xf32>
    %412 = arith.truncf %411 : vector<16x128xf32> to vector<16x128xbf16>
    %cst_158 = arith.constant dense<0.000000e+00> : vector<16x32xf32>
    %413 = tpu.matmul %412, %283, %cst_158 {dimension_numbers = #tpu.dot_dimension_numbers<[1], [1], [0], [0], [0, 0, 1, 0], [], []>} : vector<16x128xbf16>, vector<32x128xbf16>, vector<16x32xf32> -> vector<16x32xf32>
    %414 = vector.broadcast %287 : vector<1x32xf32> to vector<16x32xf32>
    %415 = arith.addf %413, %414 : vector<16x32xf32>
    %416 = arith.addf %394, %415 : vector<16x32xf32>
    %cst_159 = arith.constant dense<0.000000e+00> : vector<16xf32>
    %417 = vector.multi_reduction <add>, %416, %cst_159 [1] : vector<16x32xf32> to vector<16xf32>
    %418 = vector.shape_cast %417 : vector<16xf32> to vector<16x1xf32>
    %cst_160 = arith.constant 3.200000e+01 : f32
    %419 = vector.broadcast %cst_160 : f32 to vector<16x1xf32>
    %420 = arith.divf %418, %419 : vector<16x1xf32>
    %421 = vector.broadcast %420 : vector<16x1xf32> to vector<16x32xf32>
    %422 = arith.subf %416, %421 : vector<16x32xf32>
    %423 = arith.mulf %422, %422 : vector<16x32xf32>
    %cst_161 = arith.constant dense<0.000000e+00> : vector<16xf32>
    %424 = vector.multi_reduction <add>, %423, %cst_161 [1] : vector<16x32xf32> to vector<16xf32>
    %425 = vector.shape_cast %424 : vector<16xf32> to vector<16x1xf32>
    %cst_162 = arith.constant 3.200000e+01 : f32
    %426 = vector.broadcast %cst_162 : f32 to vector<16x1xf32>
    %427 = arith.divf %425, %426 : vector<16x1xf32>
    %cst_163 = arith.constant 9.99999974E-6 : f32
    %428 = vector.broadcast %cst_163 : f32 to vector<16x1xf32>
    %429 = arith.addf %427, %428 : vector<16x1xf32>
    %430 = math.rsqrt %429 : vector<16x1xf32>
    %431 = vector.broadcast %430 : vector<16x1xf32> to vector<16x32xf32>
    %432 = arith.mulf %422, %431 : vector<16x32xf32>
    %433 = vector.broadcast %275 : vector<1x32xf32> to vector<16x32xf32>
    %434 = arith.mulf %432, %433 : vector<16x32xf32>
    %435 = vector.broadcast %277 : vector<1x32xf32> to vector<16x32xf32>
    %436 = arith.addf %434, %435 : vector<16x32xf32>
    %c39 = arith.constant 39 : index
    %c0_164 = arith.constant 0 : index
    %437 = vector.load %arg2[%c39, %c0_164] : memref<104x128xf32, #tpu.memory_space<vmem>>, vector<8x16xf32>
    %438 = arith.truncf %437 : vector<8x16xf32> to vector<8x16xbf16>
    %439 = arith.truncf %436 : vector<16x32xf32> to vector<16x32xbf16>
    %cst_165 = arith.constant dense<0.000000e+00> : vector<8x32xf32>
    %440 = tpu.matmul %438, %439, %cst_165 {dimension_numbers = #tpu.dot_dimension_numbers<[1], [0], [0], [1], [0, 0, 1, 1], [], []>} : vector<8x16xbf16>, vector<16x32xbf16>, vector<8x32xf32> -> vector<8x32xf32>
    %c47 = arith.constant 47 : index
    %c0_166 = arith.constant 0 : index
    %441 = vector.load %arg2[%c47, %c0_166] : memref<104x128xf32, #tpu.memory_space<vmem>>, vector<32x16xf32>
    %442 = arith.truncf %441 : vector<32x16xf32> to vector<32x16xbf16>
    %443 = arith.truncf %440 : vector<8x32xf32> to vector<8x32xbf16>
    %cst_167 = arith.constant dense<0.000000e+00> : vector<8x16xf32>
    %444 = tpu.matmul %443, %442, %cst_167 {dimension_numbers = #tpu.dot_dimension_numbers<[1], [0], [0], [1], [0, 0, 1, 1], [], []>} : vector<8x32xbf16>, vector<32x16xbf16>, vector<8x16xf32> -> vector<8x16xf32>
    %c79 = arith.constant 79 : index
    %c0_168 = arith.constant 0 : index
    %445 = vector.load %arg2[%c79, %c0_168] : memref<104x128xf32, #tpu.memory_space<vmem>>, vector<1x16xf32>
    %446 = vector.broadcast %445 : vector<1x16xf32> to vector<8x16xf32>
    %447 = arith.addf %444, %446 : vector<8x16xf32>
    %cst_169 = arith.constant 5.000000e-01 : f32
    %448 = vector.broadcast %cst_169 : f32 to vector<8x16xf32>
    %449 = arith.mulf %448, %447 : vector<8x16xf32>
    %cst_170 = arith.constant 4.471500e-02 : f32
    %450 = vector.broadcast %cst_170 : f32 to vector<8x16xf32>
    %451 = arith.mulf %450, %447 : vector<8x16xf32>
    %452 = arith.mulf %451, %447 : vector<8x16xf32>
    %453 = arith.mulf %452, %447 : vector<8x16xf32>
    %454 = arith.addf %447, %453 : vector<8x16xf32>
    %cst_171 = arith.constant 0.797884583 : f32
    %455 = vector.broadcast %cst_171 : f32 to vector<8x16xf32>
    %456 = arith.mulf %455, %454 : vector<8x16xf32>
    %457 = math.tanh %456 : vector<8x16xf32>
    %cst_172 = arith.constant 1.000000e+00 : f32
    %458 = vector.broadcast %cst_172 : f32 to vector<8x16xf32>
    %459 = arith.addf %458, %457 : vector<8x16xf32>
    %460 = arith.mulf %449, %459 : vector<8x16xf32>
    %c80 = arith.constant 80 : index
    %c0_173 = arith.constant 0 : index
    %461 = vector.load %arg2[%c80, %c0_173] : memref<104x128xf32, #tpu.memory_space<vmem>>, vector<16x128xf32>
    %462 = arith.truncf %461 : vector<16x128xf32> to vector<16x128xbf16>
    %463 = arith.truncf %460 : vector<8x16xf32> to vector<8x16xbf16>
    %cst_174 = arith.constant dense<0.000000e+00> : vector<8x128xf32>
    %464 = tpu.matmul %463, %462, %cst_174 {dimension_numbers = #tpu.dot_dimension_numbers<[1], [0], [0], [1], [0, 0, 1, 1], [], []>} : vector<8x16xbf16>, vector<16x128xbf16>, vector<8x128xf32> -> vector<8x128xf32>
    %c96_175 = arith.constant 96 : index
    %c0_176 = arith.constant 0 : index
    %465 = vector.load %arg2[%c96_175, %c0_176] : memref<104x128xf32, #tpu.memory_space<vmem>>, vector<1x128xf32>
    %466 = vector.broadcast %465 : vector<1x128xf32> to vector<8x128xf32>
    %467 = arith.addf %464, %466 : vector<8x128xf32>
    %cst_177 = arith.constant 0.000000e+00 : f32
    %468 = vector.broadcast %cst_177 : f32 to vector<8x128xf32>
    %469 = arith.subf %468, %467 : vector<8x128xf32>
    %470 = math.exp %469 : vector<8x128xf32>
    %cst_178 = arith.constant 1.000000e+00 : f32
    %471 = vector.broadcast %cst_178 : f32 to vector<8x128xf32>
    %472 = arith.addf %471, %470 : vector<8x128xf32>
    %cst_179 = arith.constant 1.000000e+00 : f32
    %473 = vector.broadcast %cst_179 : f32 to vector<8x128xf32>
    %474 = arith.divf %473, %472 : vector<8x128xf32>
    %c0_180 = arith.constant 0 : index
    %c0_181 = arith.constant 0 : index
    %475 = vector.load %arg3[%c0_180, %c0_181] : memref<8x128xf32, #tpu.memory_space<vmem>>, vector<8x128xf32>
    tpu.vector_store %arg3[%c0_180, %c0_181], %474 {strides = array<i32>} : memref<8x128xf32, #tpu.memory_space<vmem>>, vector<8x128xf32>,
    return
  }
}

</mosaic_0001>

<bundles_post_ra>
// kernel: fire_transformer_forward.1
= control target key start
LH: loop header
LB: loop body
LE: loop exit
PB: predicated region body
PF: predicated region fallthrough
CT: control target
= control target key end

     0   :  { %8 = vsyncpa [#allocation3], 0  ;;  %s3017_s0 = inlined_call_operand.hbm [shape: f32[16,20], index: 0, kind: input, shape index: {}]   ;;  %s3018_s1 = inlined_call_operand.hbm [shape: f32[2,136,128], index: 1, kind: input, shape index: {}]   ;;  %s3019_s2 = inlined_call_operand.hbm [shape: f32[104,128], index: 2, kind: input, shape index: {}]   ;;  %s3020_s3 = inlined_call_operand.vmem [shape: f32[8,128], index: 3, kind: output, shape index: {}]  }
   0x1   :  { %9 = vsyncpa [#allocation5], 0  ;;  %s2637_s12 = smov [#allocation4]   ;;  %s2638_s14 = smov [#allocation2]  }
   0x2   :  { %s27_s13 = sshll.u32 %s2637_s12, 4  ;;  %s15_s15 = sshll.u32 %s2638_s14, 4  ;;  %s28_s13 = int_to_ptr.vmem [resolvable:$true] %s27_s13  ;;  %s2678_s15 = int_to_ptr.vmem [resolvable:$true] %s15_s15 }
   0x3   :  { %s2567_s18 = scalar_lea.hbm %s3018_s1, 4352 }
   0x4   :  { %p2568_p0 = scmp.ne.s32.totalorder %s3018_s1, %s2567_s18  ;;  %p2571_p1 = scmp.lt.u32.totalorder %s2567_s18, %s3018_s1 }
   0x6   :  { %p2573_p2 = pnand %p2571_p1, %p2568_p0 }
   0x8   :  { %2576 = shalt.err (!%p2573_p2)
}
   0x9   :  { %s2577_s23 = scalar_lea.vmem %s28_s13, 4352  ;;  %p2582_p4 = scmp.lt.s32.totalorder %s28_s13, %s28_s13 }
   0xa   :  { %p2578_p3 = scmp.ne.s32.totalorder %s28_s13, %s2577_s23  ;;  %p2583_p5 = scmp.lt.s32.totalorder %s2577_s23, %s2577_s23 }
   0xc   :  { %p2584_p6 = por %p2583_p5, %p2582_p4 }
   0xe   :  { %p2585_p7 = pnand %p2584_p6, %p2578_p3 }
  0x10   :  { %2588 = shalt.err (!%p2585_p7)
}
  0x11   :  { %s2639_s24 = smov 128   ;;  %s2640_s25 = smov 8  }
  0x12   :  { %33 = dma.hbm_to_vmem [thread:$0]  %s3018_s1, 4352, %s28_s13, [#allocation5], %s2639_s24, %s2639_s24, %s2640_s25  }
  0x13   :  { %s2589_s30 = scalar_lea.hbm %s3017_s0, 256 }
  0x14   :  { %p2590_p8 = scmp.ne.s32.totalorder %s3017_s0, %s2589_s30  ;;  %p2593_p9 = scmp.lt.u32.totalorder %s2589_s30, %s3017_s0 }
  0x16   :  { %p2595_p10 = pnand %p2593_p9, %p2590_p8 }
  0x18   :  { %2598 = shalt.err (!%p2595_p10)
}
  0x19   :  { %s2599_s8 = scalar_lea.vmem %s2678_s15, 256  ;;  %p2604_p12 = scmp.lt.s32.totalorder %s2678_s15, %s2678_s15 }
  0x1a   :  { %p2600_p11 = scmp.ne.s32.totalorder %s2678_s15, %s2599_s8  ;;  %p2605_p13 = scmp.lt.s32.totalorder %s2599_s8, %s2599_s8 }
  0x1c   :  { %p2606_p0 = por %p2605_p13, %p2604_p12 }
  0x1e   :  { %p2607_p1 = pnand %p2606_p0, %p2600_p11 }
  0x20   :  { %2610 = shalt.err (!%p2607_p1)
}
  0x21   :  { %21 = dma.hbm_to_vmem [thread:$0]  %s3017_s0, 256, %s2678_s15, [#allocation3], %s2639_s24, %s2639_s24, %s2640_s25  }
  0x22   :  { %s2641_s10 = smov [#allocation6]   ;;  %s2611_s14 = scalar_lea.hbm %s3019_s2, 1664 }
  0x23   :  { %s39_s11 = sshll.u32 %s2641_s10, 4  ;;  %p2612_p2 = scmp.ne.s32.totalorder %s3019_s2, %s2611_s14  ;;  %s40_s11 = int_to_ptr.vmem [resolvable:$true] %s39_s11 }
  0x24   :  { %p2615_p3 = scmp.lt.u32.totalorder %s2611_s14, %s3019_s2 }
  0x26   :  { %p2617_p4 = pnand %p2615_p3, %p2612_p2 }
  0x28   :  { %2620 = shalt.err (!%p2617_p4)
}
  0x29   :  { %s2621_s20 = scalar_lea.vmem %s40_s11, 1664  ;;  %p2626_p6 = scmp.lt.s32.totalorder %s40_s11, %s40_s11 }
  0x2a   :  { %p2622_p5 = scmp.ne.s32.totalorder %s40_s11, %s2621_s20  ;;  %p2627_p7 = scmp.lt.s32.totalorder %s2621_s20, %s2621_s20 }
  0x2c   :  { %p2628_p8 = por %p2627_p7, %p2626_p6 }
  0x2e   :  { %p2629_p9 = pnand %p2628_p8, %p2622_p5 }
  0x30   :  { %2632 = shalt.err (!%p2629_p9)
}
  0x31   :  { %45 = dma.hbm_to_vmem [thread:$0]  %s3019_s2, 1664, %s40_s11, [#allocation5], %s2639_s24, %s2639_s24, %s2640_s25  }
  0x32   :  { %2633 = dma.done.wait [#allocation3], 256  }
  0x33   :  { %2634 = vsyncadd [#allocation3], 4294967040 }
  0x34   :  { %2635 = dma.done.wait [#allocation5], 6016  }
  0x35   :  { %2636 = vsyncadd [#allocation5], 4294961280  ;;  %vm60_vm0 = vcmask 162816   ;;  %v56_v0 = vld [vmem:[#allocation2] sm:$0xff]  ;;  %v57_v1 = vld [vmem:[#allocation2 + $0x8] sm:$0xff]  ;;  %v2642_v17 = vmov 0.0  }
  0x36   :  { %v61_v2 = vsel %vm60_vm0, %v56_v0, 0.0  ;;  %v64_v3 = vsel %vm60_vm0, %v57_v1, 0.0  ;;  %v100_v14 = vld [vmem:[#allocation6 + $0x2] sm:$0xff]  ;;  %v101_v15 = vld [vmem:[#allocation6 + $0xa] sm:$0xff]  ;;  %2226 = vmatprep.subr.bf16.mxu0 %v2642_v17  ;;  %v102_v18 = vld [vmem:[#allocation6 + $0x12] sm:$0xf]  ;;  %2234 = vmatprep.subr.bf16.mxu1 %v2642_v17 }
  0x37   :  { %62 = vadd.xlane.f32.xlu0 %v61_v2  ;;  %v103_v16 = vpack.c.bf16 %v101_v15, %v100_v14  ;;  %vm114_vm1 = vcmask 1041408   ;;  %v104_v19 = vpack.c.bf16 %v102_v18, %v102_v18  ;;  %vm2643_vm2 = vmmov 0   ;;  %v2113_v29 = vld [vmem:[#allocation6] ss:$0 sm:$0xff]  ;;  %v2114_v33 = vld [vmem:[#allocation6 + $0x1] ss:$0 sm:$0xff] }
  0x38   :  { %2230 = vmatprep.mubr.msk.bf16.mxu0 %vm2643_vm2, %v2642_v17  ;;  %2238 = vmatprep.mubr.msk.bf16.mxu1 %vm2643_vm2, %v2642_v17  ;;  %v226_v38 = vld [vmem:[#allocation4] sm:$0xff]  ;;  %v227_v39 = vld [vmem:[#allocation4 + $0x8] sm:$0xff]  ;;  %v228_v40 = vld [vmem:[#allocation4 + $0x10] sm:$0xff]  ;;  %vm263_vm3 = vcmask 261120   ;;  %s2644_s2 = smov 88   ;;  %s2645_s21 = smov 96  }
  0x39   :  { %2227 = vmatpush3.bf16.msra.mxu0 %v103_v16  ;;  %v116_v20 = vsel %vm114_vm1, %v104_v19, 0  ;;  %v230_v41 = vpack.c.bf16 %v227_v39, %v226_v38  ;;  %v229_v42 = vld [vmem:[#allocation4 + $0x18] sm:$0xff]  ;;  %v2115_v44 = vld [vmem:[#allocation6 + $0x16] ss:$0 sm:$0xff]  ;;  %s2646_s22 = smov 120   ;;  %s2647_s23 = smov 112  }
  0x3a   :  { %2228 = vmatprep.subr.bf16.mxu0 %v2642_v17  ;;  %v231_v43 = vpack.c.bf16 %v229_v42, %v228_v40  ;;  %s2648_s24 = smov 80   ;;  %s2649_s26 = smov 104   ;;  %vm312_vm4 = vcmask 64512   ;;  %v2651_v38 = vmov -1e+30   ;;  %vm364_vm7 = vcmask 130048  }
  0x3b   :  { %65 = vadd.xlane.f32.xlu0 %v64_v3  ;;  %2235 = vmatpush3.bf16.msra.mxu1 %v230_v41  ;;  %s2650_s27 = smov 72   ;;  %s2652_s28 = smov 64   ;;  %vm838_vm8 = vcmask 195584  }
  0x3c   :  { %2236 = vmatprep.subr.bf16.mxu1 %v2642_v17  ;;  %s2653_s29 = smov 48   ;;  %s2654_s30 = smov 40  }
  0x3d   :  { %2229 = vmatpush3.bf16.msra.mxu0 %v116_v20  ;;  %s2655_s4 = smov 56   ;;  %s2656_s5 = smov 16  }
  0x3e   :  { %2242 = vmatprep.subr.bf16.mxu0 %v2642_v17  ;;  %s2657_s6 = smov 24  }
  0x3f   :  { %2237 = vmatpush3.bf16.msra.mxu1 %v231_v43 }
  0x40   :  { %2248 = vmatprep.subr.bf16.mxu1 %v2642_v17 }
  0xc4   :  { %v63_v4 = vpop.xlane.xlu0 %62 }
  0xc5   :  { %v68_v5 = vmul.f32 0.05, %v63_v4  ;;  %v177_v4 = vld [vmem:[#allocation6 + $0x17] sm:$0xff] }
  0xc7   :  { %v70_v6 = vsub.f32 %v56_v0, %v68_v5  ;;  %v178_v5 = vld [vmem:[#allocation6 + $0x1f] sm:$0xff] }
  0xc8   :  { %v66_v7 = vpop.xlane.xlu0 %65 }
  0xc9   :  { %v69_v8 = vmul.f32 0.05, %v66_v7  ;;  %v72_v9 = vmul.f32 %v70_v6, %v70_v6 }
  0xcb   :  { %v71_v10 = vsub.f32 %v57_v1, %v69_v8  ;;  %v74_v11 = vsel %vm60_vm0, %v72_v9, 0.0 }
  0xcc   :  { %75 = vadd.xlane.f32.xlu1 %v74_v11 }
  0xcd   :  { %v73_v12 = vmul.f32 %v71_v10, %v71_v10 }
  0xcf   :  { %v77_v13 = vsel %vm60_vm0, %v73_v12, 0.0 }
  0xd0   :  { %78 = vadd.xlane.f32.xlu1 %v77_v13 }
 0x159   :  { %v76_v21 = vpop.xlane.xlu1 %75 }
 0x15a   :  { %v80_v22 = vmul.f32 0.05, %v76_v21 }
 0x15c   :  { %v82_v23 = vadd.f32 1e-05, %v80_v22 }
 0x15d   :  { %v79_v24 = vpop.xlane.xlu1 %78 }
 0x15e   :  { %2465 = vrsqrt.f32 %v82_v23  ;;  %v81_v25 = vmul.f32 0.05, %v79_v24 }
 0x160   :  { %v83_v26 = vadd.f32 1e-05, %v81_v25 }
 0x162   :  { %2467 = vrsqrt.f32 %v83_v26 }
 0x168   :  { %v2466_v27 = vpop.eup %2465 }
 0x169   :  { %v86_v28 = vmul.f32 %v2466_v27, %v70_v6 }
 0x16b   :  { %v92_v32 = vmul.f32 %v2113_v29, %v86_v28 }
 0x16c   :  { %v2468_v30 = vpop.eup %2467 }
 0x16d   :  { %v87_v31 = vmul.f32 %v2468_v30, %v71_v10  ;;  %v98_v35 = vadd.f32 %v2114_v33, %v92_v32  ;;  %v2117_v10 = vld [vmem:[#allocation4 + $0x80] ss:$0 sm:$0xff]  ;;  %v181_v30 = vlaneseq }
 0x16f   :  { %v93_v34 = vmul.f32 %v2113_v29, %v87_v31  ;;  %v182_v31 = vshrl.u32 %v181_v30, 7  ;;  %v185_v32 = vand.u32 127, %v181_v30 }
 0x171   :  { %v99_v36 = vadd.f32 %v2114_v33, %v93_v34  ;;  %v183_v33 = vadd.s32 8, %v182_v31  ;;  %v190_v34 = vand.u32 7, %v182_v31 }
 0x173   :  { %v105_v37 = vpack.c.bf16 %v99_v36, %v98_v35  ;;  %v214_v35 = vand.u32 7, %v185_v32  ;;  %v197_v36 = vand.u32 7, %v183_v33 }
 0x175   :  { %2231 = vmatmul.mubr.msk.bf16.vlgmr.msra.gmra.mrb[0].mxu0 %vm60_vm0, %v105_v37  ;;  %vm222_vm5 = vcmp.eq.s32.totalorder %v190_v34, %v214_v35  ;;  %vm223_vm6 = vcmp.eq.s32.totalorder %v197_v36, %v214_v35 }
 0x176   :  { %2244 = vmatprep.mubr.msk.bf16.mxu0 %vm2643_vm2, %v2642_v17  ;;  %v2793_v39 = vsel %vm222_vm5, 0.0, %v2651_v38  ;;  %v2795_v43 = vsel %vm223_vm6, 0.0, %v2651_v38 }
 0x248   :  { %v152_v45 = vpop.f32.mrb[0].mxu0 }
 0x249   :  { %v153_v46 = vadd.f32 %v2115_v44, %v152_v45  ;;  %v2232_v47 = vpop.f32.mrb[1].mxu0 }
 0x24a   :  { %v155_v48 = vpop.f32.mrb[2].mxu0 }
 0x24b   :  { %v161_v49 = vmul.f32 0.044715, %v153_v46  ;;  %v156_v50 = vadd.f32 %v2115_v44, %v155_v48  ;;  %v2233_v51 = vpop.f32.mrb[3].mxu0  ;;  %v159_v62 = vmul.f32 0.5, %v153_v46 }
 0x24d   :  { %v163_v52 = vmul.f32 %v161_v49, %v153_v46  ;;  %v162_v53 = vmul.f32 0.044715, %v156_v50  ;;  %v160_v1 = vmul.f32 0.5, %v156_v50 }
 0x24f   :  { %v165_v54 = vmul.f32 %v163_v52, %v153_v46  ;;  %v164_v55 = vmul.f32 %v162_v53, %v156_v50 }
 0x251   :  { %v167_v56 = vadd.f32 %v165_v54, %v153_v46  ;;  %v166_v57 = vmul.f32 %v164_v55, %v156_v50 }
 0x253   :  { %v169_v58 = vmul.f32 0.7978846, %v167_v56  ;;  %v168_v59 = vadd.f32 %v166_v57, %v156_v50 }
 0x255   :  { %2469 = vtanh.f32 %v169_v58  ;;  %v170_v60 = vmul.f32 0.7978846, %v168_v59 }
 0x257   :  { %2471 = vtanh.f32 %v170_v60 }
 0x25f   :  { %v2470_v61 = vpop.eup %2469 }
 0x260   :  { %v173_v63 = vadd.f32 1.0, %v2470_v61 }
 0x261   :  { %v2472_v0 = vpop.eup %2471 }
 0x262   :  { %v174_v2 = vadd.f32 1.0, %v2472_v0  ;;  %v175_v3 = vmul.f32 %v173_v63, %v159_v62 }
 0x264   :  { %v176_v6 = vmul.f32 %v174_v2, %v160_v1  ;;  %v2747_v7 = vadd.f32 %v177_v4, %v175_v3 }
 0x266   :  { %v2749_v8 = vadd.f32 %v178_v5, %v176_v6 }
 0x268   :  { %v258_v9 = vpack.c.bf16 %v2749_v8, %v2747_v7 }
 0x26a   :  { %2239 = vmatmul.mubr.msk.bf16.vlgmr.msra.gmra.mrb[0].mxu1 %vm263_vm3, %v258_v9 }
 0x26b   :  { %2250 = vmatprep.mubr.msk.bf16.mxu1 %vm2643_vm2, %v2642_v17 }
 0x33d   :  { %v301_v11 = vpop.f32.mrb[0].mxu1 }
 0x33e   :  { %v2240_v12 = vpop.f32.mrb[1].mxu1  ;;  %v302_v14 = vadd.f32 %v2117_v10, %v301_v11 }
 0x33f   :  { %v304_v13 = vpop.f32.mrb[2].mxu1 }
 0x340   :  { %v305_v15 = vadd.f32 %v2117_v10, %v304_v13  ;;  %v2241_v16 = vpop.f32.mrb[3].mxu1 }
 0x342   :  { %v2756_v18 = vpack.c.bf16 %v305_v15, %v302_v14 }
 0x344   :  { %437 = vrot.lane.b32.xlu1 %v2756_v18, %s2644_s2  ;;  %310 = vrot.lane.b32.xlu0 %v2756_v18, %s2645_s21 }
 0x348   :  { %435 = vrot.lane.b32.xlu1 %v2756_v18, %s2646_s22  ;;  %560 = vrot.lane.b32.xlu0 %v2756_v18, %s2647_s23 }
 0x34c   :  { %562 = vrot.lane.b32.xlu1 %v2756_v18, %s2648_s24  ;;  %685 = vrot.lane.b32.xlu0 %v2756_v18, %s2649_s26 }
 0x350   :  { %687 = vrot.lane.b32.xlu1 %v2756_v18, %s2650_s27 }
 0x3b6   :  { %v311_v19 = vpop.permute.xlu0 %310  ;;  %v438_v21 = vpop.permute.xlu1 %437 }
 0x3b7   :  { %v317_v20 = vsel %vm312_vm4, %v311_v19, 0  ;;  %v443_v23 = vsel %vm312_vm4, %v438_v21, 0 }
 0x3b8   :  { %2243 = vmatpush3.bf16.xpose.msra.mxu0 %v317_v20 }
 0x3b9   :  { %2254 = vmatprep.subr.bf16.mxu0 %v2642_v17 }
 0x3ba   :  { %v436_v22 = vpop.permute.xlu1 %435  ;;  %v561_v27 = vpop.permute.xlu0 %560 }
 0x3be   :  { %v563_v24 = vpop.permute.xlu1 %562  ;;  %v686_v29 = vpop.permute.xlu0 %685 }
 0x3bf   :  { %2245 = vmatmul.mubr.msk.bf16.vlgmr.msra.gmra.mrb[4].mxu0 %vm312_vm4, %v2756_v18  ;;  %v568_v25 = vsel %vm312_vm4, %v563_v24, 0 }
 0x3c0   :  { %2255 = vmatpush3.bf16.xpose.msra.mxu0 %v443_v23  ;;  %2256 = vmatprep.mubr.msk.bf16.mxu0 %vm2643_vm2, %v2642_v17 }
 0x3c1   :  { %2266 = vmatprep.subr.bf16.mxu0 %v2642_v17 }
 0x3c2   :  { %v688_v26 = vpop.permute.xlu1 %687 }
 0x3c3   :  { %v693_v28 = vsel %vm312_vm4, %v688_v26, 0 }
 0x3c7   :  { %2257 = vmatmul.mubr.msk.bf16.vlgmr.msra.gmra.mrb[8].mxu0 %vm312_vm4, %v436_v22 }
 0x3c8   :  { %2267 = vmatpush3.bf16.xpose.msra.mxu0 %v568_v25  ;;  %2268 = vmatprep.mubr.msk.bf16.mxu0 %vm2643_vm2, %v2642_v17 }
 0x3c9   :  { %2278 = vmatprep.subr.bf16.mxu0 %v2642_v17 }
 0x3cf   :  { %2269 = vmatmul.mubr.msk.bf16.vlgmr.msra.gmra.mrb[12].mxu0 %vm312_vm4, %v561_v27 }
 0x3d0   :  { %2279 = vmatpush3.bf16.xpose.msra.mxu0 %v693_v28  ;;  %2280 = vmatprep.mubr.msk.bf16.mxu0 %vm2643_vm2, %v2642_v17 }
 0x3d1   :  { %2290 = vmatprep.subr.bf16.mxu0 %v2642_v17 }
 0x3d7   :  { %2281 = vmatmul.mubr.msk.bf16.vlgmr.msra.gmra.mrb[16].mxu0 %vm312_vm4, %v686_v29 }
 0x3d8   :  { %2294 = vmatprep.mubr.msk.bf16.mxu0 %vm2643_vm2, %v2642_v17 }
 0x492   :  { %v353_v37 = vpop.f32.mrb[4].mxu0 }
 0x493   :  { %v360_v40 = vmul.f32 0.35355338, %v353_v37  ;;  %v2246_v41 = vpop.f32.mrb[5].mxu0 }
 0x494   :  { %v356_v42 = vpop.f32.mrb[6].mxu0 }
 0x495   :  { %v361_v44 = vmul.f32 0.35355338, %v356_v42  ;;  %v2247_v45 = vpop.f32.mrb[7].mxu0  ;;  %v362_v46 = vadd.f32 %v360_v40, %v2793_v39 }
 0x497   :  { %v365_v47 = vsel %vm364_vm7, %v362_v46, -inf  ;;  %v363_v48 = vadd.f32 %v361_v44, %v2795_v43 }
 0x498   :  { %366 = vmax.xlane.f32.xlu1 %v365_v47 }
 0x499   :  { %v368_v49 = vsel %vm364_vm7, %v363_v48, -inf }
 0x49a   :  { %369 = vmax.xlane.f32.xlu0 %v368_v49  ;;  %v479_v50 = vpop.f32.mrb[8].mxu0 }
 0x49b   :  { %v486_v51 = vmul.f32 0.35355338, %v479_v50  ;;  %v2258_v52 = vpop.f32.mrb[9].mxu0 }
 0x49c   :  { %v482_v53 = vpop.f32.mrb[10].mxu0 }
 0x49d   :  { %v487_v54 = vmul.f32 0.35355338, %v482_v53  ;;  %v2259_v55 = vpop.f32.mrb[11].mxu0  ;;  %v488_v56 = vadd.f32 %v486_v51, %v2793_v39 }
 0x49f   :  { %v490_v57 = vsel %vm364_vm7, %v488_v56, -inf  ;;  %v489_v58 = vadd.f32 %v487_v54, %v2795_v43 }
 0x4a0   :  { %491 = vmax.xlane.f32.xlu0 %v490_v57 }
 0x4a1   :  { %v493_v62 = vsel %vm364_vm7, %v489_v58, -inf }
 0x4a2   :  { %v604_v59 = vpop.f32.mrb[12].mxu0 }
 0x4a3   :  { %v611_v60 = vmul.f32 0.35355338, %v604_v59  ;;  %v2270_v61 = vpop.f32.mrb[13].mxu0 }
 0x4a4   :  { %494 = vmax.xlane.f32.xlu0 %v493_v62  ;;  %v607_v63 = vpop.f32.mrb[14].mxu0 }
 0x4a5   :  { %v612_v0 = vmul.f32 0.35355338, %v607_v63  ;;  %v2271_v1 = vpop.f32.mrb[15].mxu0  ;;  %v613_v2 = vadd.f32 %v611_v60, %v2793_v39 }
 0x4a7   :  { %v615_v3 = vsel %vm364_vm7, %v613_v2, -inf  ;;  %v614_v4 = vadd.f32 %v612_v0, %v2795_v43 }
 0x4a8   :  { %616 = vmax.xlane.f32.xlu1 %v615_v3 }
 0x4a9   :  { %v618_v5 = vsel %vm364_vm7, %v614_v4, -inf }
 0x4aa   :  { %619 = vmax.xlane.f32.xlu0 %v618_v5  ;;  %v729_v6 = vpop.f32.mrb[16].mxu0 }
 0x4ab   :  { %v736_v9 = vmul.f32 0.35355338, %v729_v6  ;;  %v2282_v10 = vpop.f32.mrb[17].mxu0 }
 0x4ac   :  { %v732_v11 = vpop.f32.mrb[18].mxu0 }
 0x4ad   :  { %v737_v12 = vmul.f32 0.35355338, %v732_v11  ;;  %v2283_v13 = vpop.f32.mrb[19].mxu0  ;;  %v738_v14 = vadd.f32 %v736_v9, %v2793_v39 }
 0x4af   :  { %v740_v15 = vsel %vm364_vm7, %v738_v14, -inf  ;;  %v739_v16 = vadd.f32 %v737_v12, %v2795_v43 }
 0x4b0   :  { %741 = vmax.xlane.f32.xlu1 %v740_v15 }
 0x4b1   :  { %v743_v19 = vsel %vm364_vm7, %v739_v16, -inf }
 0x4b2   :  { %744 = vmax.xlane.f32.xlu0 %v743_v19 }
 0x4c1   :  { %388 = vrot.lane.b32.xlu1 %v2756_v18, %s2652_s28 }
 0x525   :  { %v367_v20 = vpop.xlane.xlu1 %366 }
 0x526   :  { %v371_v21 = vsub.f32 %v362_v46, %v367_v20 }
 0x527   :  { %v370_v22 = vpop.xlane.xlu0 %369 }
 0x528   :  { %v373_v23 = vmul.f32 1.442695, %v371_v21  ;;  %v372_v24 = vsub.f32 %v363_v48, %v370_v22 }
 0x52a   :  { %2473 = vpow2.f32 %v373_v23  ;;  %v375_v25 = vmul.f32 1.442695, %v372_v24 }
 0x52c   :  { %2475 = vpow2.f32 %v375_v25 }
 0x52d   :  { %v492_v26 = vpop.xlane.xlu0 %491 }
 0x52e   :  { %v496_v27 = vsub.f32 %v488_v56, %v492_v26 }
 0x530   :  { %v498_v28 = vmul.f32 1.442695, %v496_v27 }
 0x531   :  { %v495_v29 = vpop.xlane.xlu0 %494 }
 0x532   :  { %2477 = vpow2.f32 %v498_v28  ;;  %v497_v30 = vsub.f32 %v489_v58, %v495_v29 }
 0x534   :  { %v2474_v31 = vpop.eup %2473  ;;  %v500_v32 = vmul.f32 1.442695, %v497_v30 }
 0x535   :  { %v617_v33 = vpop.xlane.xlu1 %616  ;;  %v377_v34 = vsel %vm364_vm7, %v2474_v31, 0.0 }
 0x536   :  { %v2476_v35 = vpop.eup %2475  ;;  %2479 = vpow2.f32 %v500_v32  ;;  %v621_v36 = vsub.f32 %v613_v2, %v617_v33  ;;  %378 = vadd.xlane.f32.xlu1 %v377_v34 }
 0x537   :  { %v620_v37 = vpop.xlane.xlu0 %619  ;;  %v380_v38 = vsel %vm364_vm7, %v2476_v35, 0.0 }
 0x538   :  { %v623_v40 = vmul.f32 1.442695, %v621_v36  ;;  %v622_v41 = vsub.f32 %v614_v4, %v620_v37  ;;  %381 = vadd.xlane.f32.xlu0 %v380_v38 }
 0x53a   :  { %2481 = vpow2.f32 %v623_v40  ;;  %v625_v42 = vmul.f32 1.442695, %v622_v41  ;;  %v233_v41 = vld [vmem:[#allocation4 + $0x20] sm:$0xff] }
 0x53c   :  { %v2478_v44 = vpop.eup %2477  ;;  %2483 = vpow2.f32 %v625_v42  ;;  %v234_v42 = vld [vmem:[#allocation4 + $0x28] sm:$0xff] }
 0x53d   :  { %v742_v45 = vpop.xlane.xlu1 %741  ;;  %v502_v46 = vsel %vm364_vm7, %v2478_v44, 0.0 }
 0x53e   :  { %v746_v47 = vsub.f32 %v738_v14, %v742_v45  ;;  %503 = vadd.xlane.f32.xlu1 %v502_v46  ;;  %v237_v46 = vpack.c.bf16 %v234_v42, %v233_v41 }
 0x53f   :  { %v745_v48 = vpop.xlane.xlu0 %744 }
 0x540   :  { %v2480_v49 = vpop.eup %2479  ;;  %v748_v50 = vmul.f32 1.442695, %v746_v47  ;;  %v747_v51 = vsub.f32 %v739_v16, %v745_v48  ;;  %2291 = vmatpush3.bf16.msra.mxu0 %v237_v46  ;;  %v235_v48 = vld [vmem:[#allocation4 + $0x30] sm:$0xff] }
 0x541   :  { %v389_v52 = vpop.permute.xlu1 %388  ;;  %v505_v53 = vsel %vm364_vm7, %v2480_v49, 0.0  ;;  %2292 = vmatprep.subr.bf16.mxu0 %v2642_v17 }
 0x542   :  { %2485 = vpow2.f32 %v748_v50  ;;  %v750_v54 = vmul.f32 1.442695, %v747_v51  ;;  %2249 = vmatpush3.bf16.msra.mxu1 %v389_v52  ;;  %506 = vadd.xlane.f32.xlu0 %v505_v53 }
 0x543   :  { %2260 = vmatprep.subr.bf16.mxu1 %v2642_v17 }
 0x544   :  { %v2482_v55 = vpop.eup %2481  ;;  %2487 = vpow2.f32 %v750_v54 }
 0x545   :  { %v627_v56 = vsel %vm364_vm7, %v2482_v55, 0.0 }
 0x546   :  { %v2484_v57 = vpop.eup %2483  ;;  %628 = vadd.xlane.f32.xlu1 %v627_v56 }
 0x547   :  { %v630_v58 = vsel %vm364_vm7, %v2484_v57, 0.0 }
 0x548   :  { %631 = vadd.xlane.f32.xlu0 %v630_v58 }
 0x54c   :  { %v2486_v59 = vpop.eup %2485 }
 0x54d   :  { %v752_v60 = vsel %vm364_vm7, %v2486_v59, 0.0 }
 0x54e   :  { %v2488_v61 = vpop.eup %2487  ;;  %753 = vadd.xlane.f32.xlu1 %v752_v60 }
 0x54f   :  { %v755_v62 = vsel %vm364_vm7, %v2488_v61, 0.0 }
 0x550   :  { %756 = vadd.xlane.f32.xlu0 %v755_v62 }
 0x55f   :  { %638 = vrot.lane.b32.xlu1 %v2756_v18, %s2653_s29 }
 0x563   :  { %763 = vrot.lane.b32.xlu1 %v2756_v18, %s2654_s30 }
 0x566   :  { %513 = vrot.lane.b32.xlu0 %v2756_v18, %s2655_s4 }
 0x5c3   :  { %v379_v63 = vpop.xlane.xlu1 %378 }
 0x5c4   :  { %2489 = vrcp.f32 %v379_v63 }
 0x5c5   :  { %v382_v0 = vpop.xlane.xlu0 %381 }
 0x5c6   :  { %2491 = vrcp.f32 %v382_v0 }
 0x5cb   :  { %v504_v6 = vpop.xlane.xlu1 %503 }
 0x5ce   :  { %v2490_v1 = vpop.eup %2489 }
 0x5cf   :  { %v507_v2 = vpop.xlane.xlu0 %506  ;;  %v385_v4 = vmul.f32 %v2490_v1, %v2474_v31 }
 0x5d0   :  { %v2492_v3 = vpop.eup %2491  ;;  %2493 = vrcp.f32 %v507_v2 }
 0x5d1   :  { %v386_v5 = vmul.f32 %v2492_v3, %v2476_v35  ;;  %2495 = vrcp.f32 %v504_v6 }
 0x5d3   :  { %v387_v9 = vpack.c.bf16 %v386_v5, %v385_v4  ;;  %v629_v18 = vpop.xlane.xlu1 %628 }
 0x5d5   :  { %2251 = vmatmul.mubr.msk.bf16.vlgmr.msra.gmra.mrb[4].mxu1 %vm364_vm7, %v387_v9  ;;  %v632_v10 = vpop.xlane.xlu0 %631 }
 0x5d6   :  { %2262 = vmatprep.mubr.msk.bf16.mxu1 %vm2643_vm2, %v2642_v17  ;;  %2497 = vrcp.f32 %v632_v10 }
 0x5d7   :  { %2499 = vrcp.f32 %v629_v18 }
 0x5da   :  { %v2494_v11 = vpop.eup %2493 }
 0x5db   :  { %v2496_v13 = vpop.eup %2495  ;;  %v511_v14 = vmul.f32 %v2494_v11, %v2480_v49  ;;  %v754_v15 = vpop.xlane.xlu1 %753  ;;  %v236_v49 = vld [vmem:[#allocation4 + $0x38] sm:$0xff] }
 0x5dc   :  { %v510_v16 = vmul.f32 %v2496_v13, %v2478_v44  ;;  %v238_v51 = vpack.c.bf16 %v236_v49, %v235_v48  ;;  %v2127_v13 = vld [vmem:[#allocation4 + $0x83] ss:$0 sm:$0xff] }
 0x5dd   :  { %v757_v12 = vpop.xlane.xlu0 %756 }
 0x5de   :  { %2501 = vrcp.f32 %v757_v12  ;;  %v512_v20 = vpack.c.bf16 %v511_v14, %v510_v16  ;;  %2293 = vmatpush3.bf16.msra.mxu0 %v238_v51 }
 0x5df   :  { %2503 = vrcp.f32 %v754_v15  ;;  %v639_v22 = vpop.permute.xlu1 %638  ;;  %2306 = vmatprep.subr.bf16.mxu0 %v2642_v17 }
 0x5e0   :  { %v2498_v21 = vpop.eup %2497 }
 0x5e1   :  { %v514_v19 = vpop.permute.xlu0 %513  ;;  %v2500_v23 = vpop.eup %2499  ;;  %v636_v24 = vmul.f32 %v2498_v21, %v2484_v57 }
 0x5e2   :  { %2261 = vmatpush3.bf16.msra.mxu1 %v514_v19  ;;  %v635_v25 = vmul.f32 %v2500_v23, %v2482_v55 }
 0x5e3   :  { %2272 = vmatprep.subr.bf16.mxu1 %v2642_v17  ;;  %v764_v28 = vpop.permute.xlu1 %763 }
 0x5e4   :  { %v637_v26 = vpack.c.bf16 %v636_v24, %v635_v25 }
 0x5e5   :  { %2263 = vmatmul.mubr.msk.bf16.vlgmr.msra.gmra.mrb[8].mxu1 %vm364_vm7, %v512_v20 }
 0x5e6   :  { %2273 = vmatpush3.bf16.msra.mxu1 %v639_v22  ;;  %2274 = vmatprep.mubr.msk.bf16.mxu1 %vm2643_vm2, %v2642_v17 }
 0x5e7   :  { %2284 = vmatprep.subr.bf16.mxu1 %v2642_v17 }
 0x5e8   :  { %v2502_v27 = vpop.eup %2501 }
 0x5e9   :  { %v2504_v29 = vpop.eup %2503  ;;  %v761_v30 = vmul.f32 %v2502_v27, %v2488_v61 }
 0x5ea   :  { %v760_v31 = vmul.f32 %v2504_v29, %v2486_v59 }
 0x5ec   :  { %v762_v32 = vpack.c.bf16 %v761_v30, %v760_v31 }
 0x5ed   :  { %2275 = vmatmul.mubr.msk.bf16.vlgmr.msra.gmra.mrb[12].mxu1 %vm364_vm7, %v637_v26 }
 0x5ee   :  { %2285 = vmatpush3.bf16.msra.mxu1 %v764_v28  ;;  %2286 = vmatprep.mubr.msk.bf16.mxu1 %vm2643_vm2, %v2642_v17 }
 0x5ef   :  { %2298 = vmatprep.subr.bf16.mxu1 %v2642_v17 }
 0x5f5   :  { %2287 = vmatmul.mubr.msk.bf16.vlgmr.msra.gmra.mrb[16].mxu1 %vm364_vm7, %v762_v32 }
 0x5f6   :  { %2302 = vmatprep.mubr.msk.bf16.mxu1 %vm2643_vm2, %v2642_v17 }
 0x6a8   :  { %v428_v33 = vpop.f32.mrb[4].mxu1 }
 0x6a9   :  { %v2252_v34 = vpop.f32.mrb[5].mxu1 }
 0x6aa   :  { %v431_v35 = vpop.f32.mrb[6].mxu1 }
 0x6ab   :  { %v2253_v36 = vpop.f32.mrb[7].mxu1 }
 0x6b8   :  { %v553_v37 = vpop.f32.mrb[8].mxu1 }
 0x6b9   :  { %v2264_v38 = vpop.f32.mrb[9].mxu1 }
 0x6ba   :  { %v556_v40 = vpop.f32.mrb[10].mxu1  ;;  %v247_v38 = vld [vmem:[#allocation4 + $0x58] sm:$0xff] }
 0x6bb   :  { %v2435_v44 = vpack.i.bf16 %v556_v40, %v553_v37  ;;  %v2265_v45 = vpop.f32.mrb[11].mxu1  ;;  %v246_v37 = vld [vmem:[#allocation4 + $0x50] sm:$0xff] }
 0x6bc   :  { %v249_v40 = vpack.c.bf16 %v247_v38, %v246_v37 }
 0x6bd   :  { %2436 = vrot.lane.b32.xlu1 %v2435_v44, %s2640_s25 }
 0x6c0   :  { %v678_v47 = vpop.f32.mrb[12].mxu1 }
 0x6c1   :  { %v2276_v50 = vpop.f32.mrb[13].mxu1 }
 0x6c2   :  { %v681_v52 = vpop.f32.mrb[14].mxu1  ;;  %v2129_v50 = vld [vmem:[#allocation4 + $0x84] ss:$0 sm:$0xff] }
 0x6c3   :  { %v2440_v53 = vpack.i.bf16 %v681_v52, %v678_v47  ;;  %v2277_v54 = vpop.f32.mrb[15].mxu1 }
 0x6c4   :  { %v2130_v54 = vld [vmem:[#allocation4 + $0x85] ss:$0 sm:$0xff] }
 0x6c5   :  { %2441 = vrot.lane.b32.xlu0 %v2440_v53, %s2656_s5 }
 0x6c8   :  { %v803_v55 = vpop.f32.mrb[16].mxu1 }
 0x6c9   :  { %v2288_v56 = vpop.f32.mrb[17].mxu1 }
 0x6ca   :  { %v806_v57 = vpop.f32.mrb[18].mxu1 }
 0x6cb   :  { %v2445_v58 = vpack.i.bf16 %v806_v57, %v803_v55  ;;  %v2289_v59 = vpop.f32.mrb[19].mxu1 }
 0x6cc   :  { %v250_v59 = vld [vmem:[#allocation4 + $0x60] sm:$0xff] }
 0x6cd   :  { %2446 = vrot.lane.b32.xlu1 %v2445_v58, %s2657_s6 }
 0x72f   :  { %v2437_v60 = vpop.permute.xlu1 %2436 }
 0x730   :  { %v2439_v62 = vunpack.i.h.bf16 %v2437_v60  ;;  %v2438_v63 = vunpack.i.l.bf16 %v2437_v60  ;;  %v251_v60 = vld [vmem:[#allocation4 + $0x68] sm:$0xff] }
 0x732   :  { %v835_v3 = vsel %vm312_vm4, %v431_v35, %v2439_v62  ;;  %v834_v4 = vsel %vm312_vm4, %v428_v33, %v2438_v63  ;;  %v244_v35 = vld [vmem:[#allocation4 + $0x40] sm:$0xff]  ;;  %v252_v62 = vld [vmem:[#allocation4 + $0x70] sm:$0xff]  ;;  %v253_v63 = vld [vmem:[#allocation4 + $0x78] sm:$0xff] }
 0x737   :  { %v2442_v61 = vpop.permute.xlu0 %2441 }
 0x738   :  { %v2444_v0 = vunpack.i.h.bf16 %v2442_v61  ;;  %v2443_v1 = vunpack.i.l.bf16 %v2442_v61  ;;  %v254_v61 = vpack.c.bf16 %v251_v60, %v250_v59 }
 0x73a   :  { %v837_v9 = vsel %vm364_vm7, %v835_v3, %v2444_v0  ;;  %v836_v10 = vsel %vm364_vm7, %v834_v4, %v2443_v1  ;;  %v255_v0 = vpack.c.bf16 %v253_v63, %v252_v62  ;;  %v2131_v1 = vld [vmem:[#allocation4 + $0x81] ss:$0 sm:$0xff] }
 0x73f   :  { %v2447_v2 = vpop.permute.xlu1 %2446 }
 0x740   :  { %v2449_v5 = vunpack.i.h.bf16 %v2447_v2  ;;  %v2448_v6 = vunpack.i.l.bf16 %v2447_v2 }
 0x742   :  { %v840_v18 = vsel %vm838_vm8, %v837_v9, %v2449_v5  ;;  %v839_v11 = vsel %vm838_vm8, %v836_v10, %v2448_v6 }
 0x743   :  { %v841_v12 = vpack.c.bf16 %v840_v18, %v839_v11 }
 0x745   :  { %2295 = vmatmul.mubr.msk.bf16.vlgmr.msra.gmra.mrb[20].mxu0 %vm263_vm3, %v841_v12 }
 0x746   :  { %2310 = vmatprep.mubr.msk.bf16.mxu0 %vm2643_vm2, %v2642_v17  ;;  %2307 = vmatpush3.bf16.xpose.msra.mxu0 %v254_v61 }
 0x747   :  { %2308 = vmatprep.subr.bf16.mxu0 %v2642_v17 }
 0x74e   :  { %2309 = vmatpush3.bf16.xpose.msra.mxu0 %v255_v0  ;;  %v2134_v0 = vld [vmem:[#allocation4 + $0x86] ss:$0 sm:$0xff] }
 0x74f   :  { %2328 = vmatprep.subr.bf16.mxu0 %v2642_v17 }
 0x818   :  { %v883_v14 = vpop.f32.mrb[20].mxu0 }
 0x819   :  { %v884_v15 = vadd.f32 %v2127_v13, %v883_v14  ;;  %v2296_v16 = vpop.f32.mrb[21].mxu0 }
 0x81a   :  { %v886_v19 = vpop.f32.mrb[22].mxu0 }
 0x81b   :  { %v887_v20 = vadd.f32 %v2127_v13, %v886_v19  ;;  %v2297_v21 = vpop.f32.mrb[23].mxu0  ;;  %v890_v22 = vadd.f32 %v884_v15, %v2747_v7 }
 0x81d   :  { %v892_v23 = vsel %vm263_vm3, %v890_v22, 0.0  ;;  %v891_v24 = vadd.f32 %v887_v20, %v2749_v8  ;;  %v245_v8 = vld [vmem:[#allocation4 + $0x48] sm:$0xff] }
 0x81e   :  { %893 = vadd.xlane.f32.xlu0 %v892_v23  ;;  %v248_v36 = vpack.c.bf16 %v245_v8, %v244_v35 }
 0x81f   :  { %v895_v25 = vsel %vm263_vm3, %v891_v24, 0.0 }
 0x820   :  { %896 = vadd.xlane.f32.xlu1 %v895_v25  ;;  %2299 = vmatpush3.bf16.msra.mxu1 %v248_v36 }
 0x821   :  { %2300 = vmatprep.subr.bf16.mxu1 %v2642_v17 }
 0x824   :  { %2301 = vmatpush3.bf16.msra.mxu1 %v249_v40 }
 0x825   :  { %2314 = vmatprep.subr.bf16.mxu1 %v2642_v17 }
 0x8ab   :  { %v894_v26 = vpop.xlane.xlu0 %893 }
 0x8ac   :  { %v899_v27 = vmul.f32 0.03125, %v894_v26 }
 0x8ad   :  { %v897_v28 = vpop.xlane.xlu1 %896 }
 0x8ae   :  { %v901_v29 = vsub.f32 %v890_v22, %v899_v27  ;;  %v900_v30 = vmul.f32 0.03125, %v897_v28 }
 0x8b0   :  { %v902_v31 = vsub.f32 %v891_v24, %v900_v30  ;;  %v903_v32 = vmul.f32 %v901_v29, %v901_v29  ;;  %v2133_v30 = vld [vmem:[#allocation4 + $0x82] ss:$0 sm:$0xff] }
 0x8b2   :  { %v905_v33 = vsel %vm263_vm3, %v903_v32, 0.0  ;;  %v904_v34 = vmul.f32 %v902_v31, %v902_v31 }
 0x8b3   :  { %906 = vadd.xlane.f32.xlu0 %v905_v33 }
 0x8b4   :  { %v908_v7 = vsel %vm263_vm3, %v904_v34, 0.0 }
 0x8b7   :  { %909 = vadd.xlane.f32.xlu0 %v908_v7 }
 0x940   :  { %v907_v41 = vpop.xlane.xlu0 %906 }
 0x941   :  { %v911_v42 = vmul.f32 0.03125, %v907_v41 }
 0x943   :  { %v913_v44 = vadd.f32 1e-05, %v911_v42 }
 0x944   :  { %v910_v45 = vpop.xlane.xlu0 %909 }
 0x945   :  { %2505 = vrsqrt.f32 %v913_v44  ;;  %v912_v46 = vmul.f32 0.03125, %v910_v45 }
 0x947   :  { %v914_v47 = vadd.f32 1e-05, %v912_v46 }
 0x949   :  { %2507 = vrsqrt.f32 %v914_v47 }
 0x94f   :  { %v2506_v48 = vpop.eup %2505 }
 0x950   :  { %v917_v49 = vmul.f32 %v2506_v48, %v901_v29 }
 0x952   :  { %v923_v52 = vmul.f32 %v2129_v50, %v917_v49 }
 0x953   :  { %v2508_v51 = vpop.eup %2507 }
 0x954   :  { %v918_v53 = vmul.f32 %v2508_v51, %v902_v31  ;;  %v929_v56 = vadd.f32 %v2130_v54, %v923_v52  ;;  %v1085_v51 = vld [vmem:[#allocation4 + $0x88] sm:$0xff]  ;;  %v1086_v52 = vld [vmem:[#allocation4 + $0x90] sm:$0xff] }
 0x956   :  { %v924_v55 = vmul.f32 %v2129_v50, %v918_v53  ;;  %v1089_v53 = vpack.c.bf16 %v1086_v52, %v1085_v51 }
 0x958   :  { %v930_v57 = vadd.f32 %v2130_v54, %v924_v55  ;;  %v1087_v54 = vld [vmem:[#allocation4 + $0x98] sm:$0xff]  ;;  %v1088_v55 = vld [vmem:[#allocation4 + $0xa0] sm:$0xff] }
 0x95a   :  { %v931_v58 = vpack.c.bf16 %v930_v57, %v929_v56 }
 0x95c   :  { %2303 = vmatmul.mubr.msk.bf16.vlgmr.msra.gmra.mrb[20].mxu1 %vm263_vm3, %v931_v58 }
 0x95d   :  { %2318 = vmatprep.mubr.msk.bf16.mxu1 %vm2643_vm2, %v2642_v17  ;;  %2315 = vmatpush3.bf16.msra.mxu1 %v1089_v53 }
 0x95e   :  { %2316 = vmatprep.subr.bf16.mxu1 %v2642_v17 }
 0xa2f   :  { %v973_v2 = vpop.f32.mrb[20].mxu1 }
 0xa30   :  { %v974_v3 = vadd.f32 %v2131_v1, %v973_v2  ;;  %v2304_v4 = vpop.f32.mrb[21].mxu1 }
 0xa31   :  { %v976_v5 = vpop.f32.mrb[22].mxu1 }
 0xa32   :  { %v982_v6 = vmul.f32 0.044715, %v974_v3  ;;  %v977_v9 = vadd.f32 %v2131_v1, %v976_v5  ;;  %v2305_v10 = vpop.f32.mrb[23].mxu1  ;;  %v980_v24 = vmul.f32 0.5, %v974_v3  ;;  %v2135_v5 = vld [vmem:[#allocation4 + $0x87] ss:$0 sm:$0xff] }
 0xa34   :  { %v984_v18 = vmul.f32 %v982_v6, %v974_v3  ;;  %v983_v11 = vmul.f32 0.044715, %v977_v9  ;;  %v981_v25 = vmul.f32 0.5, %v977_v9 }
 0xa36   :  { %v986_v12 = vmul.f32 %v984_v18, %v974_v3  ;;  %v985_v13 = vmul.f32 %v983_v11, %v977_v9  ;;  %v2136_v11 = vld [vmem:[#allocation4 + $0x108] ss:$0 sm:$0xff] }
 0xa38   :  { %v988_v14 = vadd.f32 %v986_v12, %v974_v3  ;;  %v987_v15 = vmul.f32 %v985_v13, %v977_v9 }
 0xa3a   :  { %v990_v16 = vmul.f32 0.7978846, %v988_v14  ;;  %v989_v19 = vadd.f32 %v987_v15, %v977_v9 }
 0xa3c   :  { %2509 = vtanh.f32 %v990_v16  ;;  %v991_v20 = vmul.f32 0.7978846, %v989_v19 }
 0xa3e   :  { %2511 = vtanh.f32 %v991_v20 }
 0xa46   :  { %v2510_v21 = vpop.eup %2509 }
 0xa47   :  { %v994_v22 = vadd.f32 1.0, %v2510_v21 }
 0xa48   :  { %v2512_v23 = vpop.eup %2511 }
 0xa49   :  { %v995_v26 = vadd.f32 1.0, %v2512_v23  ;;  %v996_v27 = vmul.f32 %v994_v22, %v980_v24 }
 0xa4b   :  { %v997_v28 = vmul.f32 %v995_v26, %v981_v25 }
 0xa4d   :  { %v998_v29 = vpack.c.bf16 %v997_v28, %v996_v27 }
 0xa4f   :  { %2311 = vmatmul.mubr.bf16.vlgmr.msra.gmra.mrb[24].mxu0 %v998_v29 }
 0xa50   :  { %2330 = vmatprep.mubr.msk.bf16.mxu0 %vm2643_vm2, %v2642_v17 }
 0xb22   :  { %v1037_v31 = vpop.f32.mrb[24].mxu0 }
 0xb23   :  { %v1038_v32 = vadd.f32 %v2133_v30, %v1037_v31  ;;  %v2312_v33 = vpop.f32.mrb[25].mxu0 }
 0xb24   :  { %v1040_v34 = vpop.f32.mrb[26].mxu0 }
 0xb25   :  { %v1041_v7 = vadd.f32 %v2133_v30, %v1040_v34  ;;  %v2313_v35 = vpop.f32.mrb[27].mxu0  ;;  %v1044_v8 = vadd.f32 %v1038_v32, %v929_v56  ;;  %v1090_v56 = vpack.c.bf16 %v1088_v55, %v1087_v54 }
 0xb27   :  { %v1046_v36 = vsel %vm263_vm3, %v1044_v8, 0.0  ;;  %v1045_v37 = vadd.f32 %v1041_v7, %v930_v57  ;;  %2317 = vmatpush3.bf16.msra.mxu1 %v1090_v56 }
 0xb28   :  { %1047 = vadd.xlane.f32.xlu0 %v1046_v36  ;;  %2322 = vmatprep.subr.bf16.mxu1 %v2642_v17 }
 0xb29   :  { %v1049_v38 = vsel %vm263_vm3, %v1045_v37, 0.0 }
 0xb2a   :  { %1050 = vadd.xlane.f32.xlu1 %v1049_v38 }
 0xbb5   :  { %v1048_v40 = vpop.xlane.xlu0 %1047 }
 0xbb6   :  { %v1052_v41 = vmul.f32 0.03125, %v1048_v40 }
 0xbb7   :  { %v1051_v42 = vpop.xlane.xlu1 %1050 }
 0xbb8   :  { %v1054_v44 = vsub.f32 %v1044_v8, %v1052_v41  ;;  %v1053_v45 = vmul.f32 0.03125, %v1051_v42 }
 0xbba   :  { %v1055_v46 = vsub.f32 %v1045_v37, %v1053_v45  ;;  %v1056_v47 = vmul.f32 %v1054_v44, %v1054_v44 }
 0xbbc   :  { %v1058_v48 = vsel %vm263_vm3, %v1056_v47, 0.0  ;;  %v1057_v49 = vmul.f32 %v1055_v46, %v1055_v46 }
 0xbbd   :  { %1059 = vadd.xlane.f32.xlu0 %v1058_v48 }
 0xbbe   :  { %v1061_v50 = vsel %vm263_vm3, %v1057_v49, 0.0 }
 0xbbf   :  { %1062 = vadd.xlane.f32.xlu1 %v1061_v50 }
 0xc4a   :  { %v1060_v57 = vpop.xlane.xlu0 %1059 }
 0xc4b   :  { %v1064_v58 = vmul.f32 0.03125, %v1060_v57 }
 0xc4c   :  { %v1063_v59 = vpop.xlane.xlu1 %1062 }
 0xc4d   :  { %v1066_v60 = vadd.f32 1e-05, %v1064_v58  ;;  %v1065_v61 = vmul.f32 0.03125, %v1063_v59 }
 0xc4f   :  { %2513 = vrsqrt.f32 %v1066_v60  ;;  %v1067_v62 = vadd.f32 1e-05, %v1065_v61 }
 0xc51   :  { %2515 = vrsqrt.f32 %v1067_v62 }
 0xc59   :  { %v2514_v63 = vpop.eup %2513 }
 0xc5a   :  { %v1070_v1 = vmul.f32 %v2514_v63, %v1054_v44 }
 0xc5b   :  { %v2516_v2 = vpop.eup %2515 }
 0xc5c   :  { %v1076_v3 = vmul.f32 %v2134_v0, %v1070_v1  ;;  %v1071_v4 = vmul.f32 %v2516_v2, %v1055_v46 }
 0xc5e   :  { %v1077_v6 = vmul.f32 %v2134_v0, %v1071_v4  ;;  %v2880_v9 = vadd.f32 %v2135_v5, %v1076_v3 }
 0xc60   :  { %v2882_v10 = vadd.f32 %v2135_v5, %v1077_v6 }
 0xc62   :  { %v1117_v18 = vpack.c.bf16 %v2882_v10, %v2880_v9 }
 0xc64   :  { %2319 = vmatmul.mubr.msk.bf16.vlgmr.msra.gmra.mrb[24].mxu1 %vm263_vm3, %v1117_v18 }
 0xc65   :  { %2324 = vmatprep.mubr.msk.bf16.mxu1 %vm2643_vm2, %v2642_v17 }
 0xd37   :  { %v1159_v12 = vpop.f32.mrb[24].mxu1 }
 0xd38   :  { %v2320_v13 = vpop.f32.mrb[25].mxu1  ;;  %v1160_v15 = vadd.f32 %v2136_v11, %v1159_v12 }
 0xd39   :  { %v1162_v14 = vpop.f32.mrb[26].mxu1 }
 0xd3a   :  { %v1163_v16 = vadd.f32 %v2136_v11, %v1162_v14  ;;  %v2321_v19 = vpop.f32.mrb[27].mxu1 }
 0xd3c   :  { %v2889_v20 = vpack.c.bf16 %v1163_v16, %v1160_v15 }
 0xd3e   :  { %1293 = vrot.lane.b32.xlu1 %v2889_v20, %s2644_s2  ;;  %1168 = vrot.lane.b32.xlu0 %v2889_v20, %s2645_s21 }
 0xd42   :  { %1291 = vrot.lane.b32.xlu1 %v2889_v20, %s2646_s22  ;;  %1416 = vrot.lane.b32.xlu0 %v2889_v20, %s2647_s23 }
 0xd46   :  { %1418 = vrot.lane.b32.xlu1 %v2889_v20, %s2648_s24  ;;  %1541 = vrot.lane.b32.xlu0 %v2889_v20, %s2649_s26 }
 0xd4a   :  { %1543 = vrot.lane.b32.xlu1 %v2889_v20, %s2650_s27 }
 0xdb0   :  { %v1169_v21 = vpop.permute.xlu0 %1168  ;;  %v1294_v23 = vpop.permute.xlu1 %1293 }
 0xdb1   :  { %v1174_v22 = vsel %vm312_vm4, %v1169_v21, 0  ;;  %v1299_v25 = vsel %vm312_vm4, %v1294_v23, 0 }
 0xdb2   :  { %2323 = vmatpush3.bf16.xpose.msra.mxu1 %v1174_v22 }
 0xdb3   :  { %2334 = vmatprep.subr.bf16.mxu1 %v2642_v17 }
 0xdb4   :  { %v1292_v24 = vpop.permute.xlu1 %1291  ;;  %v1417_v29 = vpop.permute.xlu0 %1416 }
 0xdb8   :  { %v1419_v26 = vpop.permute.xlu1 %1418  ;;  %v1542_v31 = vpop.permute.xlu0 %1541 }
 0xdb9   :  { %2325 = vmatmul.mubr.msk.bf16.vlgmr.msra.gmra.mrb[28].mxu1 %vm312_vm4, %v2889_v20  ;;  %v1424_v27 = vsel %vm312_vm4, %v1419_v26, 0 }
 0xdba   :  { %2335 = vmatpush3.bf16.xpose.msra.mxu1 %v1299_v25  ;;  %2336 = vmatprep.mubr.msk.bf16.mxu1 %vm2643_vm2, %v2642_v17 }
 0xdbb   :  { %2346 = vmatprep.subr.bf16.mxu1 %v2642_v17 }
 0xdbc   :  { %v1544_v28 = vpop.permute.xlu1 %1543 }
 0xdbd   :  { %v1549_v30 = vsel %vm312_vm4, %v1544_v28, 0 }
 0xdc1   :  { %2337 = vmatmul.mubr.msk.bf16.vlgmr.msra.gmra.mrb[32].mxu1 %vm312_vm4, %v1292_v24 }
 0xdc2   :  { %2347 = vmatpush3.bf16.xpose.msra.mxu1 %v1424_v27  ;;  %2348 = vmatprep.mubr.msk.bf16.mxu1 %vm2643_vm2, %v2642_v17 }
 0xdc3   :  { %2358 = vmatprep.subr.bf16.mxu1 %v2642_v17 }
 0xdc9   :  { %2349 = vmatmul.mubr.msk.bf16.vlgmr.msra.gmra.mrb[36].mxu1 %vm312_vm4, %v1417_v29 }
 0xdca   :  { %2359 = vmatpush3.bf16.xpose.msra.mxu1 %v1549_v30  ;;  %2360 = vmatprep.mubr.msk.bf16.mxu1 %vm2643_vm2, %v2642_v17 }
 0xdcb   :  { %2370 = vmatprep.subr.bf16.mxu1 %v2642_v17 }
 0xdd1   :  { %2361 = vmatmul.mubr.msk.bf16.vlgmr.msra.gmra.mrb[40].mxu1 %vm312_vm4, %v1542_v31 }
 0xdd2   :  { %2374 = vmatprep.mubr.msk.bf16.mxu1 %vm2643_vm2, %v2642_v17 }
 0xe8c   :  { %v1210_v32 = vpop.f32.mrb[28].mxu1 }
 0xe8d   :  { %v1217_v33 = vmul.f32 0.35355338, %v1210_v32  ;;  %v2326_v34 = vpop.f32.mrb[29].mxu1 }
 0xe8e   :  { %v1213_v7 = vpop.f32.mrb[30].mxu1 }
 0xe8f   :  { %v1218_v35 = vmul.f32 0.35355338, %v1213_v7  ;;  %v2327_v8 = vpop.f32.mrb[31].mxu1  ;;  %v1219_v36 = vadd.f32 %v1217_v33, %v2793_v39 }
 0xe91   :  { %v1221_v37 = vsel %vm364_vm7, %v1219_v36, -inf  ;;  %v1220_v38 = vadd.f32 %v1218_v35, %v2795_v43 }
 0xe92   :  { %1222 = vmax.xlane.f32.xlu1 %v1221_v37 }
 0xe93   :  { %v1224_v40 = vsel %vm364_vm7, %v1220_v38, -inf }
 0xe94   :  { %1225 = vmax.xlane.f32.xlu0 %v1224_v40  ;;  %v1335_v41 = vpop.f32.mrb[32].mxu1 }
 0xe95   :  { %v1342_v42 = vmul.f32 0.35355338, %v1335_v41  ;;  %v2338_v44 = vpop.f32.mrb[33].mxu1 }
 0xe96   :  { %v1338_v45 = vpop.f32.mrb[34].mxu1 }
 0xe97   :  { %v1343_v46 = vmul.f32 0.35355338, %v1338_v45  ;;  %v2339_v47 = vpop.f32.mrb[35].mxu1  ;;  %v1344_v48 = vadd.f32 %v1342_v42, %v2793_v39 }
 0xe99   :  { %v1346_v49 = vsel %vm364_vm7, %v1344_v48, -inf  ;;  %v1345_v50 = vadd.f32 %v1343_v46, %v2795_v43 }
 0xe9a   :  { %1347 = vmax.xlane.f32.xlu0 %v1346_v49 }
 0xe9b   :  { %v1349_v54 = vsel %vm364_vm7, %v1345_v50, -inf }
 0xe9c   :  { %v1460_v51 = vpop.f32.mrb[36].mxu1 }
 0xe9d   :  { %v1467_v52 = vmul.f32 0.35355338, %v1460_v51  ;;  %v2350_v53 = vpop.f32.mrb[37].mxu1 }
 0xe9e   :  { %1350 = vmax.xlane.f32.xlu0 %v1349_v54  ;;  %v1463_v55 = vpop.f32.mrb[38].mxu1 }
 0xe9f   :  { %v1468_v56 = vmul.f32 0.35355338, %v1463_v55  ;;  %v2351_v57 = vpop.f32.mrb[39].mxu1  ;;  %v1469_v58 = vadd.f32 %v1467_v52, %v2793_v39 }
 0xea1   :  { %v1471_v59 = vsel %vm364_vm7, %v1469_v58, -inf  ;;  %v1470_v60 = vadd.f32 %v1468_v56, %v2795_v43 }
 0xea2   :  { %1472 = vmax.xlane.f32.xlu1 %v1471_v59 }
 0xea3   :  { %v1474_v61 = vsel %vm364_vm7, %v1470_v60, -inf }
 0xea4   :  { %1475 = vmax.xlane.f32.xlu0 %v1474_v61  ;;  %v1585_v62 = vpop.f32.mrb[40].mxu1 }
 0xea5   :  { %v1592_v63 = vmul.f32 0.35355338, %v1585_v62  ;;  %v2362_v0 = vpop.f32.mrb[41].mxu1 }
 0xea6   :  { %v1588_v1 = vpop.f32.mrb[42].mxu1 }
 0xea7   :  { %v1593_v2 = vmul.f32 0.35355338, %v1588_v1  ;;  %v2363_v3 = vpop.f32.mrb[43].mxu1  ;;  %v1594_v4 = vadd.f32 %v1592_v63, %v2793_v39 }
 0xea9   :  { %v1596_v5 = vsel %vm364_vm7, %v1594_v4, -inf  ;;  %v1595_v6 = vadd.f32 %v1593_v2, %v2795_v43 }
 0xeaa   :  { %1597 = vmax.xlane.f32.xlu1 %v1596_v5 }
 0xeab   :  { %v1599_v18 = vsel %vm364_vm7, %v1595_v6, -inf }
 0xeac   :  { %1600 = vmax.xlane.f32.xlu0 %v1599_v18 }
 0xebb   :  { %1244 = vrot.lane.b32.xlu1 %v2889_v20, %s2652_s28 }
 0xf1f   :  { %v1223_v11 = vpop.xlane.xlu1 %1222 }
 0xf20   :  { %v1227_v12 = vsub.f32 %v1219_v36, %v1223_v11 }
 0xf21   :  { %v1226_v13 = vpop.xlane.xlu0 %1225 }
 0xf22   :  { %v1229_v14 = vmul.f32 1.442695, %v1227_v12  ;;  %v1228_v15 = vsub.f32 %v1220_v38, %v1226_v13 }
 0xf24   :  { %2517 = vpow2.f32 %v1229_v14  ;;  %v1231_v16 = vmul.f32 1.442695, %v1228_v15 }
 0xf26   :  { %2519 = vpow2.f32 %v1231_v16 }
 0xf27   :  { %v1348_v39 = vpop.xlane.xlu0 %1347 }
 0xf28   :  { %v1352_v19 = vsub.f32 %v1344_v48, %v1348_v39 }
 0xf2a   :  { %v1354_v21 = vmul.f32 1.442695, %v1352_v19 }
 0xf2b   :  { %v1351_v22 = vpop.xlane.xlu0 %1350 }
 0xf2c   :  { %2521 = vpow2.f32 %v1354_v21  ;;  %v1353_v43 = vsub.f32 %v1345_v50, %v1351_v22 }
 0xf2e   :  { %v2518_v23 = vpop.eup %2517  ;;  %v1356_v24 = vmul.f32 1.442695, %v1353_v43 }
 0xf2f   :  { %v1473_v25 = vpop.xlane.xlu1 %1472  ;;  %v1233_v26 = vsel %vm364_vm7, %v2518_v23, 0.0 }
 0xf30   :  { %v2520_v27 = vpop.eup %2519  ;;  %2523 = vpow2.f32 %v1356_v24  ;;  %v1477_v28 = vsub.f32 %v1469_v58, %v1473_v25  ;;  %1234 = vadd.xlane.f32.xlu1 %v1233_v26 }
 0xf31   :  { %v1476_v29 = vpop.xlane.xlu0 %1475  ;;  %v1236_v30 = vsel %vm364_vm7, %v2520_v27, 0.0 }
 0xf32   :  { %v1479_v31 = vmul.f32 1.442695, %v1477_v28  ;;  %v1478_v32 = vsub.f32 %v1470_v60, %v1476_v29  ;;  %1237 = vadd.xlane.f32.xlu0 %v1236_v30  ;;  %v1092_v30 = vld [vmem:[#allocation4 + $0xa8] sm:$0xff] }
 0xf34   :  { %2525 = vpow2.f32 %v1479_v31  ;;  %v1481_v33 = vmul.f32 1.442695, %v1478_v32  ;;  %v1093_v31 = vld [vmem:[#allocation4 + $0xb0] sm:$0xff] }
 0xf36   :  { %v2522_v34 = vpop.eup %2521  ;;  %2527 = vpow2.f32 %v1481_v33 }
 0xf37   :  { %v1598_v7 = vpop.xlane.xlu1 %1597  ;;  %v1358_v35 = vsel %vm364_vm7, %v2522_v34, 0.0 }
 0xf38   :  { %v1602_v8 = vsub.f32 %v1594_v4, %v1598_v7  ;;  %1359 = vadd.xlane.f32.xlu1 %v1358_v35  ;;  %v1094_v35 = vld [vmem:[#allocation4 + $0xb8] sm:$0xff] }
 0xf39   :  { %v1601_v36 = vpop.xlane.xlu0 %1600 }
 0xf3a   :  { %v2524_v37 = vpop.eup %2523  ;;  %v1604_v38 = vmul.f32 1.442695, %v1602_v8  ;;  %v1603_v40 = vsub.f32 %v1595_v6, %v1601_v36  ;;  %v1095_v8 = vld [vmem:[#allocation4 + $0xc0] sm:$0xff] }
 0xf3b   :  { %v1245_v41 = vpop.permute.xlu1 %1244  ;;  %v1361_v42 = vsel %vm364_vm7, %v2524_v37, 0.0 }
 0xf3c   :  { %2529 = vpow2.f32 %v1604_v38  ;;  %v1606_v44 = vmul.f32 1.442695, %v1603_v40  ;;  %2329 = vmatpush3.bf16.msra.mxu0 %v1245_v41  ;;  %1362 = vadd.xlane.f32.xlu0 %v1361_v42 }
 0xf3d   :  { %2340 = vmatprep.subr.bf16.mxu0 %v2642_v17 }
 0xf3e   :  { %v2526_v45 = vpop.eup %2525  ;;  %2531 = vpow2.f32 %v1606_v44 }
 0xf3f   :  { %v1483_v46 = vsel %vm364_vm7, %v2526_v45, 0.0 }
 0xf40   :  { %v2528_v47 = vpop.eup %2527  ;;  %1484 = vadd.xlane.f32.xlu1 %v1483_v46 }
 0xf41   :  { %v1486_v48 = vsel %vm364_vm7, %v2528_v47, 0.0 }
 0xf42   :  { %1487 = vadd.xlane.f32.xlu0 %v1486_v48 }
 0xf46   :  { %v2530_v49 = vpop.eup %2529 }
 0xf47   :  { %v1608_v50 = vsel %vm364_vm7, %v2530_v49, 0.0 }
 0xf48   :  { %v2532_v51 = vpop.eup %2531  ;;  %1609 = vadd.xlane.f32.xlu1 %v1608_v50 }
 0xf49   :  { %v1611_v52 = vsel %vm364_vm7, %v2532_v51, 0.0 }
 0xf4a   :  { %1612 = vadd.xlane.f32.xlu0 %v1611_v52 }
 0xf59   :  { %1494 = vrot.lane.b32.xlu1 %v2889_v20, %s2653_s29 }
 0xf5d   :  { %1619 = vrot.lane.b32.xlu1 %v2889_v20, %s2654_s30 }
 0xf60   :  { %1369 = vrot.lane.b32.xlu0 %v2889_v20, %s2655_s4 }
 0xfbd   :  { %v1235_v53 = vpop.xlane.xlu1 %1234 }
 0xfbe   :  { %2533 = vrcp.f32 %v1235_v53 }
 0xfbf   :  { %v1238_v54 = vpop.xlane.xlu0 %1237 }
 0xfc0   :  { %2535 = vrcp.f32 %v1238_v54 }
 0xfc5   :  { %v1360_v60 = vpop.xlane.xlu1 %1359 }
 0xfc8   :  { %v2534_v55 = vpop.eup %2533 }
 0xfc9   :  { %v1363_v56 = vpop.xlane.xlu0 %1362  ;;  %v1241_v58 = vmul.f32 %v2534_v55, %v2518_v23 }
 0xfca   :  { %v2536_v57 = vpop.eup %2535  ;;  %2537 = vrcp.f32 %v1363_v56 }
 0xfcb   :  { %v1242_v59 = vmul.f32 %v2536_v57, %v2520_v27  ;;  %2539 = vrcp.f32 %v1360_v60 }
 0xfcd   :  { %v1243_v61 = vpack.c.bf16 %v1242_v59, %v1241_v58  ;;  %v1485_v20 = vpop.xlane.xlu1 %1484 }
 0xfcf   :  { %2331 = vmatmul.mubr.msk.bf16.vlgmr.msra.gmra.mrb[28].mxu0 %vm364_vm7, %v1243_v61  ;;  %v1488_v62 = vpop.xlane.xlu0 %1487 }
 0xfd0   :  { %2342 = vmatprep.mubr.msk.bf16.mxu0 %vm2643_vm2, %v2642_v17  ;;  %2541 = vrcp.f32 %v1488_v62 }
 0xfd1   :  { %2543 = vrcp.f32 %v1485_v20 }
 0xfd4   :  { %v2538_v63 = vpop.eup %2537 }
 0xfd5   :  { %v2540_v1 = vpop.eup %2539  ;;  %v1367_v2 = vmul.f32 %v2538_v63, %v2524_v37  ;;  %v1610_v3 = vpop.xlane.xlu1 %1609  ;;  %v1097_v37 = vpack.c.bf16 %v1095_v8, %v1094_v35  ;;  %v2146_v63 = vld [vmem:[#allocation4 + $0x10b] ss:$0 sm:$0xff]  ;;  %v2148_v35 = vld [vmem:[#allocation4 + $0x10c] ss:$0 sm:$0xff] }
 0xfd6   :  { %v1366_v4 = vmul.f32 %v2540_v1, %v2522_v34  ;;  %v1096_v34 = vpack.c.bf16 %v1093_v31, %v1092_v30 }
 0xfd7   :  { %v1613_v0 = vpop.xlane.xlu0 %1612 }
 0xfd8   :  { %2545 = vrcp.f32 %v1613_v0  ;;  %v1368_v6 = vpack.c.bf16 %v1367_v2, %v1366_v4  ;;  %2371 = vmatpush3.bf16.msra.mxu1 %v1096_v34 }
 0xfd9   :  { %2547 = vrcp.f32 %v1610_v3  ;;  %v1495_v11 = vpop.permute.xlu1 %1494  ;;  %2372 = vmatprep.subr.bf16.mxu1 %v2642_v17 }
 0xfda   :  { %v2542_v18 = vpop.eup %2541 }
 0xfdb   :  { %v1370_v5 = vpop.permute.xlu0 %1369  ;;  %v2544_v12 = vpop.eup %2543  ;;  %v1492_v13 = vmul.f32 %v2542_v18, %v2528_v47 }
 0xfdc   :  { %2341 = vmatpush3.bf16.msra.mxu0 %v1370_v5  ;;  %v1491_v14 = vmul.f32 %v2544_v12, %v2526_v45  ;;  %2373 = vmatpush3.bf16.msra.mxu1 %v1097_v37 }
 0xfdd   :  { %2352 = vmatprep.subr.bf16.mxu0 %v2642_v17  ;;  %v1620_v39 = vpop.permute.xlu1 %1619  ;;  %2386 = vmatprep.subr.bf16.mxu1 %v2642_v17 }
 0xfde   :  { %v1493_v15 = vpack.c.bf16 %v1492_v13, %v1491_v14 }
 0xfdf   :  { %2343 = vmatmul.mubr.msk.bf16.vlgmr.msra.gmra.mrb[32].mxu0 %vm364_vm7, %v1368_v6 }
 0xfe0   :  { %2353 = vmatpush3.bf16.msra.mxu0 %v1495_v11  ;;  %2354 = vmatprep.mubr.msk.bf16.mxu0 %vm2643_vm2, %v2642_v17 }
 0xfe1   :  { %2364 = vmatprep.subr.bf16.mxu0 %v2642_v17 }
 0xfe2   :  { %v2546_v16 = vpop.eup %2545 }
 0xfe3   :  { %v2548_v19 = vpop.eup %2547  ;;  %v1617_v21 = vmul.f32 %v2546_v16, %v2532_v51 }
 0xfe4   :  { %v1616_v22 = vmul.f32 %v2548_v19, %v2530_v49 }
 0xfe6   :  { %v1618_v43 = vpack.c.bf16 %v1617_v21, %v1616_v22 }
 0xfe7   :  { %2355 = vmatmul.mubr.msk.bf16.vlgmr.msra.gmra.mrb[36].mxu0 %vm364_vm7, %v1493_v15 }
 0xfe8   :  { %2365 = vmatpush3.bf16.msra.mxu0 %v1620_v39  ;;  %2366 = vmatprep.mubr.msk.bf16.mxu0 %vm2643_vm2, %v2642_v17 }
 0xfe9   :  { %2378 = vmatprep.subr.bf16.mxu0 %v2642_v17 }
 0xfef   :  { %2367 = vmatmul.mubr.msk.bf16.vlgmr.msra.gmra.mrb[40].mxu0 %vm364_vm7, %v1618_v43 }
 0xff0   :  { %2382 = vmatprep.mubr.msk.bf16.mxu0 %vm2643_vm2, %v2642_v17 }
0x10a2   :  { %v1284_v23 = vpop.f32.mrb[28].mxu0 }
0x10a3   :  { %v2332_v24 = vpop.f32.mrb[29].mxu0 }
0x10a4   :  { %v1287_v25 = vpop.f32.mrb[30].mxu0 }
0x10a5   :  { %v2333_v26 = vpop.f32.mrb[31].mxu0 }
0x10a6   :  { %v1106_v26 = vld [vmem:[#allocation4 + $0xe0] sm:$0xff] }
0x10b2   :  { %v1409_v27 = vpop.f32.mrb[32].mxu0 }
0x10b3   :  { %v2344_v28 = vpop.f32.mrb[33].mxu0 }
0x10b4   :  { %v1412_v29 = vpop.f32.mrb[34].mxu0 }
0x10b5   :  { %v2450_v32 = vpack.i.bf16 %v1412_v29, %v1409_v27  ;;  %v2345_v33 = vpop.f32.mrb[35].mxu0 }
0x10b7   :  { %2451 = vrot.lane.b32.xlu1 %v2450_v32, %s2640_s25 }
0x10ba   :  { %v1534_v7 = vpop.f32.mrb[36].mxu0 }
0x10bb   :  { %v2356_v36 = vpop.f32.mrb[37].mxu0 }
0x10bc   :  { %v1537_v38 = vpop.f32.mrb[38].mxu0 }
0x10bd   :  { %v2455_v40 = vpack.i.bf16 %v1537_v38, %v1534_v7  ;;  %v2357_v41 = vpop.f32.mrb[39].mxu0  ;;  %v2149_v38 = vld [vmem:[#allocation4 + $0x10d] ss:$0 sm:$0xff] }
0x10bf   :  { %2456 = vrot.lane.b32.xlu0 %v2455_v40, %s2656_s5 }
0x10c2   :  { %v1659_v42 = vpop.f32.mrb[40].mxu0 }
0x10c3   :  { %v2368_v44 = vpop.f32.mrb[41].mxu0 }
0x10c4   :  { %v1662_v45 = vpop.f32.mrb[42].mxu0 }
0x10c5   :  { %v2460_v46 = vpack.i.bf16 %v1662_v45, %v1659_v42  ;;  %v2369_v47 = vpop.f32.mrb[43].mxu0  ;;  %v1109_v45 = vld [vmem:[#allocation4 + $0xe8] sm:$0xff] }
0x10c7   :  { %2461 = vrot.lane.b32.xlu1 %v2460_v46, %s2657_s6  ;;  %v1110_v46 = vld [vmem:[#allocation4 + $0xf0] sm:$0xff] }
0x10c8   :  { %v1113_v47 = vpack.c.bf16 %v1110_v46, %v1109_v45 }
0x1129   :  { %v2452_v48 = vpop.permute.xlu1 %2451 }
0x112a   :  { %v2454_v50 = vunpack.i.h.bf16 %v2452_v48  ;;  %v2453_v51 = vunpack.i.l.bf16 %v2452_v48  ;;  %v1111_v48 = vld [vmem:[#allocation4 + $0xf8] sm:$0xff] }
0x112c   :  { %v1691_v55 = vsel %vm312_vm4, %v1287_v25, %v2454_v50  ;;  %v1690_v56 = vsel %vm312_vm4, %v1284_v23, %v2453_v51  ;;  %v1103_v23 = vld [vmem:[#allocation4 + $0xc8] sm:$0xff]  ;;  %v1105_v25 = vld [vmem:[#allocation4 + $0xd8] sm:$0xff] }
0x112d   :  { %v1108_v27 = vpack.c.bf16 %v1106_v26, %v1105_v25  ;;  %v2150_v51 = vld [vmem:[#allocation4 + $0x109] ss:$0 sm:$0xff] }
0x1131   :  { %v2457_v49 = vpop.permute.xlu0 %2456 }
0x1132   :  { %v2459_v52 = vunpack.i.h.bf16 %v2457_v49  ;;  %v2458_v53 = vunpack.i.l.bf16 %v2457_v49  ;;  %v1112_v49 = vld [vmem:[#allocation4 + $0x100] sm:$0xff] }
0x1133   :  { %v1114_v50 = vpack.c.bf16 %v1112_v49, %v1111_v48 }
0x1134   :  { %v1693_v59 = vsel %vm364_vm7, %v1691_v55, %v2459_v52  ;;  %v1692_v60 = vsel %vm364_vm7, %v1690_v56, %v2458_v53 }
0x1139   :  { %v2462_v54 = vpop.permute.xlu1 %2461 }
0x113a   :  { %v2464_v57 = vunpack.i.h.bf16 %v2462_v54  ;;  %v2463_v58 = vunpack.i.l.bf16 %v2462_v54 }
0x113c   :  { %v1695_v61 = vsel %vm838_vm8, %v1693_v59, %v2464_v57  ;;  %v1694_v62 = vsel %vm838_vm8, %v1692_v60, %v2463_v58 }
0x113d   :  { %v1696_v20 = vpack.c.bf16 %v1695_v61, %v1694_v62 }
0x113f   :  { %2375 = vmatmul.mubr.msk.bf16.vlgmr.msra.gmra.mrb[44].mxu1 %vm263_vm3, %v1696_v20 }
0x1140   :  { %2390 = vmatprep.mubr.msk.bf16.mxu1 %vm2643_vm2, %v2642_v17  ;;  %2387 = vmatpush3.bf16.xpose.msra.mxu1 %v1113_v47  ;;  %v2154_v47 = vld [vmem:[#allocation4 + $0x10f] ss:$0 sm:$0xff] }
0x1141   :  { %2388 = vmatprep.subr.bf16.mxu1 %v2642_v17 }
0x1148   :  { %2389 = vmatpush3.bf16.xpose.msra.mxu1 %v1114_v50 }
0x1149   :  { %2408 = vmatprep.subr.bf16.mxu1 %v2642_v17 }
0x1212   :  { %v1738_v0 = vpop.f32.mrb[44].mxu1 }
0x1213   :  { %v1739_v1 = vadd.f32 %v2146_v63, %v1738_v0  ;;  %v2376_v2 = vpop.f32.mrb[45].mxu1 }
0x1214   :  { %v1741_v3 = vpop.f32.mrb[46].mxu1 }
0x1215   :  { %v1742_v4 = vadd.f32 %v2146_v63, %v1741_v3  ;;  %v2377_v5 = vpop.f32.mrb[47].mxu1  ;;  %v1745_v6 = vadd.f32 %v1739_v1, %v2880_v9 }
0x1217   :  { %v1747_v18 = vsel %vm263_vm3, %v1745_v6, 0.0  ;;  %v1746_v11 = vadd.f32 %v1742_v4, %v2882_v10  ;;  %v1104_v10 = vld [vmem:[#allocation4 + $0xd0] sm:$0xff] }
0x1218   :  { %1748 = vadd.xlane.f32.xlu0 %v1747_v18  ;;  %v1107_v24 = vpack.c.bf16 %v1104_v10, %v1103_v23 }
0x1219   :  { %v1750_v12 = vsel %vm263_vm3, %v1746_v11, 0.0 }
0x121a   :  { %1751 = vadd.xlane.f32.xlu1 %v1750_v12  ;;  %2379 = vmatpush3.bf16.msra.mxu0 %v1107_v24 }
0x121b   :  { %2380 = vmatprep.subr.bf16.mxu0 %v2642_v17 }
0x121e   :  { %2381 = vmatpush3.bf16.msra.mxu0 %v1108_v27 }
0x121f   :  { %2394 = vmatprep.subr.bf16.mxu0 %v2642_v17 }
0x12a5   :  { %v1749_v13 = vpop.xlane.xlu0 %1748 }
0x12a6   :  { %v1753_v14 = vmul.f32 0.03125, %v1749_v13 }
0x12a7   :  { %v1752_v15 = vpop.xlane.xlu1 %1751 }
0x12a8   :  { %v1755_v16 = vsub.f32 %v1745_v6, %v1753_v14  ;;  %v1754_v39 = vmul.f32 0.03125, %v1752_v15  ;;  %v2152_v15 = vld [vmem:[#allocation4 + $0x10a] ss:$0 sm:$0xff] }
0x12aa   :  { %v1756_v19 = vsub.f32 %v1746_v11, %v1754_v39  ;;  %v1757_v21 = vmul.f32 %v1755_v16, %v1755_v16 }
0x12ac   :  { %v1759_v22 = vsel %vm263_vm3, %v1757_v21, 0.0  ;;  %v1758_v43 = vmul.f32 %v1756_v19, %v1756_v19 }
0x12ad   :  { %1760 = vadd.xlane.f32.xlu0 %v1759_v22 }
0x12ae   :  { %v1762_v9 = vsel %vm263_vm3, %v1758_v43, 0.0 }
0x12b1   :  { %1763 = vadd.xlane.f32.xlu0 %v1762_v9 }
0x133a   :  { %v1761_v28 = vpop.xlane.xlu0 %1760 }
0x133b   :  { %v1765_v29 = vmul.f32 0.03125, %v1761_v28 }
0x133d   :  { %v1767_v30 = vadd.f32 1e-05, %v1765_v29 }
0x133e   :  { %v1764_v31 = vpop.xlane.xlu0 %1763 }
0x133f   :  { %2549 = vrsqrt.f32 %v1767_v30  ;;  %v1766_v32 = vmul.f32 0.03125, %v1764_v31 }
0x1341   :  { %v1768_v33 = vadd.f32 1e-05, %v1766_v32 }
0x1343   :  { %2551 = vrsqrt.f32 %v1768_v33 }
0x1349   :  { %v2550_v34 = vpop.eup %2549 }
0x134a   :  { %v1771_v7 = vmul.f32 %v2550_v34, %v1755_v16 }
0x134c   :  { %v1777_v36 = vmul.f32 %v2148_v35, %v1771_v7 }
0x134d   :  { %v2552_v8 = vpop.eup %2551 }
0x134e   :  { %v1772_v37 = vmul.f32 %v2552_v8, %v1756_v19  ;;  %v1783_v41 = vadd.f32 %v2149_v38, %v1777_v36 }
0x1350   :  { %v1778_v40 = vmul.f32 %v2148_v35, %v1772_v37 }
0x1352   :  { %v1784_v42 = vadd.f32 %v2149_v38, %v1778_v40 }
0x1354   :  { %v1785_v44 = vpack.c.bf16 %v1784_v42, %v1783_v41 }
0x1356   :  { %2383 = vmatmul.mubr.msk.bf16.vlgmr.msra.gmra.mrb[44].mxu0 %vm263_vm3, %v1785_v44 }
0x1357   :  { %2396 = vmatprep.mubr.msk.bf16.mxu0 %vm2643_vm2, %v2642_v17 }
0x1429   :  { %v1827_v52 = vpop.f32.mrb[44].mxu0 }
0x142a   :  { %v1828_v53 = vadd.f32 %v2150_v51, %v1827_v52  ;;  %v2384_v54 = vpop.f32.mrb[45].mxu0  ;;  %v1984_v52 = vld [vmem:[#allocation6 + $0x2f] sm:$0xff] }
0x142b   :  { %v1830_v55 = vpop.f32.mrb[46].mxu0 }
0x142c   :  { %v1836_v56 = vmul.f32 0.044715, %v1828_v53  ;;  %v1831_v57 = vadd.f32 %v2150_v51, %v1830_v55  ;;  %v2385_v58 = vpop.f32.mrb[47].mxu0  ;;  %v1834_v6 = vmul.f32 0.5, %v1828_v53  ;;  %v1938_v51 = vld [vmem:[#allocation6 + $0x27] sm:$0xff] }
0x142d   :  { %v1939_v55 = vpack.c.bf16 %v1938_v51, %v1938_v51  ;;  %v1987_v58 = vld [vmem:[#allocation6 + $0x47] sm:$0xff] }
0x142e   :  { %v1838_v59 = vmul.f32 %v1836_v56, %v1828_v53  ;;  %v1837_v60 = vmul.f32 0.044715, %v1831_v57  ;;  %v1835_v18 = vmul.f32 0.5, %v1831_v57 }
0x1430   :  { %v1840_v61 = vmul.f32 %v1838_v59, %v1828_v53  ;;  %v1839_v62 = vmul.f32 %v1837_v60, %v1831_v57 }
0x1432   :  { %v1842_v20 = vadd.f32 %v1840_v61, %v1828_v53  ;;  %v1841_v63 = vmul.f32 %v1839_v62, %v1831_v57  ;;  %v1985_v53 = vld [vmem:[#allocation6 + $0x37] sm:$0xff] }
0x1433   :  { %v1988_v56 = vpack.c.bf16 %v1985_v53, %v1984_v52 }
0x1434   :  { %v1844_v0 = vmul.f32 0.7978846, %v1842_v20  ;;  %v1843_v1 = vadd.f32 %v1841_v63, %v1831_v57  ;;  %v1986_v57 = vld [vmem:[#allocation6 + $0x3f] sm:$0xff] }
0x1435   :  { %v1989_v59 = vpack.c.bf16 %v1987_v58, %v1986_v57 }
0x1436   :  { %2553 = vtanh.f32 %v1844_v0  ;;  %v1845_v2 = vmul.f32 0.7978846, %v1843_v1  ;;  %v2048_v0 = vld [vmem:[#allocation6 + $0x50] sm:$0xff]  ;;  %v2049_v1 = vld [vmem:[#allocation6 + $0x58] sm:$0xff] }
0x1438   :  { %2555 = vtanh.f32 %v1845_v2  ;;  %v2050_v2 = vpack.c.bf16 %v2049_v1, %v2048_v0 }
0x1440   :  { %v2554_v3 = vpop.eup %2553 }
0x1441   :  { %v1848_v4 = vadd.f32 1.0, %v2554_v3  ;;  %v2156_v3 = vld [vmem:[#allocation6 + $0x4f] ss:$0 sm:$0xff] }
0x1442   :  { %v2556_v5 = vpop.eup %2555 }
0x1443   :  { %v1849_v11 = vadd.f32 1.0, %v2556_v5  ;;  %v1850_v12 = vmul.f32 %v1848_v4, %v1834_v6 }
0x1445   :  { %v1851_v13 = vmul.f32 %v1849_v11, %v1835_v18 }
0x1447   :  { %v1852_v14 = vpack.c.bf16 %v1851_v13, %v1850_v12 }
0x1449   :  { %2391 = vmatmul.mubr.bf16.vlgmr.msra.gmra.mrb[48].mxu1 %v1852_v14 }
0x144a   :  { %2410 = vmatprep.mubr.msk.bf16.mxu1 %vm2643_vm2, %v2642_v17  ;;  %2409 = vmatpush3.bf16.msra.mxu1 %v2050_v2 }
0x151c   :  { %v1891_v16 = vpop.f32.mrb[48].mxu1 }
0x151d   :  { %v1892_v39 = vadd.f32 %v2152_v15, %v1891_v16  ;;  %v2392_v19 = vpop.f32.mrb[49].mxu1 }
0x151e   :  { %v1894_v21 = vpop.f32.mrb[50].mxu1 }
0x151f   :  { %v1895_v22 = vadd.f32 %v2152_v15, %v1894_v21  ;;  %v2393_v43 = vpop.f32.mrb[51].mxu1  ;;  %v1898_v9 = vadd.f32 %v1892_v39, %v1783_v41  ;;  %v2153_v41 = vld [vmem:[#allocation4 + $0x10e] ss:$0 sm:$0xff] }
0x1520   :  { %v2158_v43 = vld [vmem:[#allocation6 + $0x60] ss:$0 sm:$0xff] }
0x1521   :  { %v1900_v23 = vsel %vm263_vm3, %v1898_v9, 0.0  ;;  %v1899_v10 = vadd.f32 %v1895_v22, %v1784_v42 }
0x1522   :  { %1901 = vadd.xlane.f32.xlu0 %v1900_v23 }
0x1523   :  { %v1903_v24 = vsel %vm263_vm3, %v1899_v10, 0.0 }
0x1524   :  { %1904 = vadd.xlane.f32.xlu1 %v1903_v24 }
0x15af   :  { %v1902_v25 = vpop.xlane.xlu0 %1901 }
0x15b0   :  { %v1906_v26 = vmul.f32 0.03125, %v1902_v25 }
0x15b1   :  { %v1905_v27 = vpop.xlane.xlu1 %1904 }
0x15b2   :  { %v1908_v28 = vsub.f32 %v1898_v9, %v1906_v26  ;;  %v1907_v29 = vmul.f32 0.03125, %v1905_v27 }
0x15b4   :  { %v1909_v30 = vsub.f32 %v1899_v10, %v1907_v29  ;;  %v1910_v31 = vmul.f32 %v1908_v28, %v1908_v28 }
0x15b6   :  { %v1912_v32 = vsel %vm263_vm3, %v1910_v31, 0.0  ;;  %v1911_v33 = vmul.f32 %v1909_v30, %v1909_v30 }
0x15b7   :  { %1913 = vadd.xlane.f32.xlu0 %v1912_v32 }
0x15b8   :  { %v1915_v34 = vsel %vm263_vm3, %v1911_v33, 0.0 }
0x15b9   :  { %1916 = vadd.xlane.f32.xlu1 %v1915_v34 }
0x1644   :  { %v1914_v7 = vpop.xlane.xlu0 %1913 }
0x1645   :  { %v1918_v35 = vmul.f32 0.03125, %v1914_v7 }
0x1646   :  { %v1917_v8 = vpop.xlane.xlu1 %1916 }
0x1647   :  { %v1920_v36 = vadd.f32 1e-05, %v1918_v35  ;;  %v1919_v37 = vmul.f32 0.03125, %v1917_v8 }
0x1649   :  { %2557 = vrsqrt.f32 %v1920_v36  ;;  %v1921_v38 = vadd.f32 1e-05, %v1919_v37 }
0x164b   :  { %2559 = vrsqrt.f32 %v1921_v38 }
0x1653   :  { %v2558_v40 = vpop.eup %2557 }
0x1654   :  { %v1924_v42 = vmul.f32 %v2558_v40, %v1908_v28 }
0x1655   :  { %v2560_v44 = vpop.eup %2559 }
0x1656   :  { %v1925_v45 = vmul.f32 %v2560_v44, %v1909_v30  ;;  %v1930_v46 = vmul.f32 %v2153_v41, %v1924_v42 }
0x1658   :  { %v1931_v48 = vmul.f32 %v2153_v41, %v1925_v45  ;;  %v1936_v49 = vadd.f32 %v2154_v47, %v1930_v46 }
0x165a   :  { %v1937_v50 = vadd.f32 %v2154_v47, %v1931_v48 }
0x165c   :  { %v1940_v54 = vpack.c.bf16 %v1937_v50, %v1936_v49 }
0x165e   :  { %2395 = vmatpush3.bf16.msra.mxu0 %v1940_v54 }
0x165f   :  { %2400 = vmatprep.subr.bf16.mxu0 %v2642_v17 }
0x1661   :  { %2397 = vmatmul.mubr.msk.bf16.vlgmr.msra.gmra.mrb[48].mxu0 %vm364_vm7, %v1939_v55 }
0x1662   :  { %2401 = vmatpush3.bf16.msra.mxu0 %v1988_v56  ;;  %2404 = vmatprep.mubr.msk.bf16.mxu0 %vm2643_vm2, %v2642_v17 }
0x1663   :  { %2402 = vmatprep.subr.bf16.mxu0 %v2642_v17 }
0x1666   :  { %2403 = vmatpush3.bf16.msra.mxu0 %v1989_v59 }
0x1734   :  { %v1978_v60 = vpop.f32.mrb[48].mxu0 }
0x1735   :  { %v1990_v61 = vpack.c.bf16 %v1978_v60, %v1978_v60  ;;  %v2398_v62 = vpop.f32.mrb[49].mxu0 }
0x1736   :  { %v1981_v20 = vpop.f32.mrb[50].mxu0 }
0x1737   :  { %2405 = vmatmul.mubr.msk.bf16.vlgmr.msra.gmra.mrb[52].mxu0 %vm263_vm3, %v1990_v61  ;;  %v2399_v63 = vpop.f32.mrb[51].mxu0 }
0x180a   :  { %v2033_v4 = vpop.f32.mrb[52].mxu0 }
0x180b   :  { %v2034_v5 = vadd.f32 %v2156_v3, %v2033_v4  ;;  %v2406_v6 = vpop.f32.mrb[53].mxu0 }
0x180c   :  { %v2036_v17 = vpop.f32.mrb[54].mxu0 }
0x180d   :  { %v2040_v18 = vmul.f32 0.044715, %v2034_v5  ;;  %v2407_v11 = vpop.f32.mrb[55].mxu0  ;;  %v2039_v39 = vmul.f32 0.5, %v2034_v5 }
0x180f   :  { %v2041_v12 = vmul.f32 %v2040_v18, %v2034_v5 }
0x1811   :  { %v2042_v13 = vmul.f32 %v2041_v12, %v2034_v5 }
0x1813   :  { %v2043_v14 = vadd.f32 %v2042_v13, %v2034_v5 }
0x1815   :  { %v2044_v15 = vmul.f32 0.7978846, %v2043_v14 }
0x1817   :  { %2561 = vtanh.f32 %v2044_v15 }
0x1821   :  { %v2562_v16 = vpop.eup %2561 }
0x1822   :  { %v2046_v19 = vadd.f32 1.0, %v2562_v16 }
0x1824   :  { %v2047_v21 = vmul.f32 %v2046_v19, %v2039_v39 }
0x1826   :  { %v2051_v22 = vpack.c.bf16 %v2047_v21, %v2047_v21 }
0x1828   :  { %2411 = vmatmul.mubr.msk.bf16.vlgmr.msra.gmra.mrb[52].mxu1 %vm364_vm7, %v2051_v22 }
0x18fb   :  { %v2094_v9 = vpop.f32.mrb[52].mxu1 }
0x18fc   :  { %v2095_v23 = vadd.f32 %v2158_v43, %v2094_v9  ;;  %v2412_v10 = vpop.f32.mrb[53].mxu1 }
0x18fd   :  { %v2097_v24 = vpop.f32.mrb[54].mxu1 }
0x18fe   :  { %v2100_v25 = vsub.f32 0.0, %v2095_v23  ;;  %v2413_v26 = vpop.f32.mrb[55].mxu1 }
0x1900   :  { %v2101_v27 = vmul.f32 1.442695, %v2100_v25 }
0x1902   :  { %2563 = vpow2.f32 %v2101_v27 }
0x190c   :  { %v2564_v28 = vpop.eup %2563 }
0x190d   :  { %v2103_v29 = vadd.f32 1.0, %v2564_v28 }
0x190f   :  { %2565 = vrcp.f32 %v2103_v29 }
0x1919   :  { %v2566_v30 = vpop.eup %2565 }
0x191a   :  { %2106 = vst [vmem:[%s3020_s3] sm:$0xff] %v2566_v30 }
0x191b   :  { %2111 = vsyncpa [#allocation3], 1 }
0x191c   :  { %2112 = vsyncpa [#allocation5], 1 }

</bundles_post_ra>
